<compile_context>
chip_gen: v7x
topology: tpu7x:2x2x1
jax: 0.10.0
libtpu: 0.0.40
codegen_flags: <defaults>
</compile_context>

<pallas_src>
import functools

import jax
import jax.numpy as jnp
from jax.experimental import pallas as pl
from jax.experimental.pallas import tpu as pltpu


IN_FEATURES = 28 * 28          # 784
HIDDEN = 700
HIDDEN_PAD = 768               # 6 * 128, clean lane tiling
OUT_FEATURES = 10
MATMUL_DTYPE = jnp.bfloat16    # MXU inputs; accumulation stays f32


def netfull_kernel(x_ref, w1_ref, b1_ref, w2_ref, b2_ref, out_ref, *, bf16_tanh):
    # x_ref:  (TB, 784) native dtype   w1_ref: (784, 768) bf16   b1_ref: (1, 768) f32
    # w2_ref: (768, 10) bf16           b2_ref: (1, 10)    f32    out_ref: (TB, 10) f32

    # In-kernel cast of x to bf16 (no-op if the caller already stores x in bf16).
    x = x_ref[...].astype(MATMUL_DTYPE)

    # Hidden layer: Linear (MXU, f32 accumulate) + bias.
    h = jnp.dot(x, w1_ref[...], preferred_element_type=jnp.float32) + b1_ref[...]

    if bf16_tanh:
        # v6e/v7x: bf16 EUP tanh, result feeds the second MXU matmul directly.
        h = jnp.tanh(h.astype(MATMUL_DTYPE))
    else:
        # v5e: no bf16 EUP path -> keep tanh in f32, cast afterwards for the MXU.
        h = jnp.tanh(h).astype(MATMUL_DTYPE)

    # Output layer: Linear(768 -> 10), f32 accumulate + bias.
    logits = jnp.dot(h, w2_ref[...], preferred_element_type=jnp.float32) + b2_ref[...]

    # log_softmax over dim=1 (numerically stable, all f32).
    m = jnp.max(logits, axis=1, keepdims=True)
    shifted = logits - m
    lse = jnp.log(jnp.sum(jnp.exp(shifted), axis=1, keepdims=True))
    out_ref[...] = (shifted - lse).astype(out_ref.dtype)


@functools.lru_cache(maxsize=1)
def _tpu_defaults():
    """Per-generation (block_batch, vmem_limit_bytes, bf16_tanh) defaults."""
    # Safe defaults for v7x (64 MiB physical VMEM, bf16 EUP) and unknown chips.
    block_batch, vmem_limit, bf16_tanh = 1024, 48 * 1024 * 1024, True
    try:
        kind = jax.devices()[0].device_kind.lower()
    except Exception:
        return block_batch, vmem_limit, bf16_tanh
    if "v5" in kind:
        # v5e: 128 MiB VMEM -> big tiles; no bf16 VPU/EUP -> f32 tanh epilogue.
        return 2048, 64 * 1024 * 1024, False
    if "v6" in kind:
        # v6e: 128 MiB VMEM, bf16 EUP -> big tiles + bf16 tanh.
        return 2048, 64 * 1024 * 1024, True
    return block_batch, vmem_limit, bf16_tanh


@functools.partial(jax.jit,
                   static_argnames=("block_batch", "vmem_limit_bytes", "bf16_tanh"))
def _netfull_forward(x, w1, b1, w2, b2, *, block_batch, vmem_limit_bytes, bf16_tanh):
    n = x.shape[0]
    # Metadata-only reshape; NO dtype cast and NO pad copy in the wrapper.
    x2d = x.reshape(n, IN_FEATURES)

    # --- One-time weight prep (small arrays, not per grid step) ---------------
    # Pad hidden dim 700 -> 768 with zeros (exact: tanh(0)=0 and zero w2 rows).
    hpad = HIDDEN_PAD - HIDDEN
    w1p = jnp.pad(w1.astype(MATMUL_DTYPE), ((0, 0), (0, hpad)))          # (784, 768)
    b1p = jnp.pad(b1.astype(jnp.float32), (0, hpad)).reshape(1, -1)      # (1, 768)
    w2p = jnp.pad(w2.astype(MATMUL_DTYPE), ((0, hpad), (0, 0)))          # (768, 10)
    b2p = b2.astype(jnp.float32).reshape(1, -1)                          # (1, 10)

    # --- Batch tiling ----------------------------------------------------------
    # tb must be a multiple of 8 (sublane); the final block may be partial and
    # Pallas masks it, so there is no x / out padding pass.
    tb = min(block_batch, max(8, ((n + 7) // 8) * 8))
    # Ensure >=2 grid steps for reasonably large batches so the "parallel" axis
    # can load-balance across both v7x TensorCores.
    if n >= 64 and pl.cdiv(n, tb) < 2:
        tb = max(8, ((pl.cdiv(n, 2) + 7) // 8) * 8)
    grid = (pl.cdiv(n, tb),)

    cost = pl.CostEstimate(
        flops=2 * n * (IN_FEATURES * HIDDEN_PAD + HIDDEN_PAD * OUT_FEATURES),
        transcendentals=n * (HIDDEN_PAD + OUT_FEATURES),
        bytes_accessed=(n * IN_FEATURES * x2d.dtype.itemsize          # x (native dtype)
                        + IN_FEATURES * HIDDEN_PAD * 2                # w1 (bf16)
                        + HIDDEN_PAD * OUT_FEATURES * 2               # w2 (bf16)
                        + (HIDDEN_PAD + OUT_FEATURES) * 4             # biases (f32)
                        + n * OUT_FEATURES * 4),                      # out (f32)
    )

    out = pl.pallas_call(
        functools.partial(netfull_kernel, bf16_tanh=bf16_tanh),
        out_shape=jax.ShapeDtypeStruct((n, OUT_FEATURES), jnp.float32),
        grid=grid,
        in_specs=[
            pl.BlockSpec((tb, IN_FEATURES), lambda i: (i, 0)),          # x: batch-tiled
            pl.BlockSpec((IN_FEATURES, HIDDEN_PAD), lambda i: (0, 0)),  # w1: resident
            pl.BlockSpec((1, HIDDEN_PAD), lambda i: (0, 0)),            # b1: resident
            pl.BlockSpec((HIDDEN_PAD, OUT_FEATURES), lambda i: (0, 0)), # w2: resident
            pl.BlockSpec((1, OUT_FEATURES), lambda i: (0, 0)),          # b2: resident
        ],
        out_specs=pl.BlockSpec((tb, OUT_FEATURES), lambda i: (i, 0)),
        compiler_params=pltpu.CompilerParams(
            dimension_semantics=("parallel",),       # shard batch tiles across TCs
            vmem_limit_bytes=vmem_limit_bytes,
        ),
        cost_estimate=cost,
    )(x2d, w1p, b1p, w2p, b2p)

    return out


def netfull_forward(x, w1, b1, w2, b2, *,
                    block_batch=None, vmem_limit_bytes=None, bf16_tanh=None):
    """x: (N, 1, 28, 28) or anything flattenable to (N, 784). Returns (N, 10) log-probs.

    w1: (784, 700), b1: (700,), w2: (700, 10), b2: (10,)  [W stored as (in, out)].
    """
    d_bb, d_vmem, d_tanh = _tpu_defaults()
    return _netfull_forward(
        x, w1, b1, w2, b2,
        block_batch=d_bb if block_batch is None else block_batch,
        vmem_limit_bytes=d_vmem if vmem_limit_bytes is None else vmem_limit_bytes,
        bf16_tanh=d_tanh if bf16_tanh is None else bf16_tanh,
    )


def init_params(key):
    """Deterministic init mimicking torch.nn.Linear defaults: U(-1/sqrt(fan_in), +)."""
    k1, k2, k3, k4 = jax.random.split(key, 4)
    bound1 = 1.0 / jnp.sqrt(IN_FEATURES)
    bound2 = 1.0 / jnp.sqrt(HIDDEN)
    # Stored as (in_features, out_features) so the kernel does x @ W (== x @ W_torch.T).
    w1 = jax.random.uniform(k1, (IN_FEATURES, HIDDEN), jnp.float32, -bound1, bound1)
    b1 = jax.random.uniform(k2, (HIDDEN,), jnp.float32, -bound1, bound1)
    w2 = jax.random.uniform(k3, (HIDDEN, OUT_FEATURES), jnp.float32, -bound2, bound2)
    b2 = jax.random.uniform(k4, (OUT_FEATURES,), jnp.float32, -bound2, bound2)
    return w1, b1, w2, b2


def netfull_ref_matched(x, w1, b1, w2, b2, *, bf16_tanh):
    """Pure-JAX reference using the same bf16-matmul / epilogue recipe as the kernel."""
    n = x.shape[0]
    x2d = x.reshape(n, IN_FEATURES).astype(MATMUL_DTYPE)
    h = jnp.dot(x2d, w1.astype(MATMUL_DTYPE), preferred_element_type=jnp.float32)
    h = h + b1.astype(jnp.float32)
    if bf16_tanh:
        h = jnp.tanh(h.astype(MATMUL_DTYPE))
    else:
        h = jnp.tanh(h).astype(MATMUL_DTYPE)
    logits = jnp.dot(h, w2.astype(MATMUL_DTYPE),
                     preferred_element_type=jnp.float32) + b2.astype(jnp.float32)
    return jax.nn.log_softmax(logits, axis=1)


def netfull_ref_f32(x, w1, b1, w2, b2):
    """Full-precision reference (loose sanity check vs the bf16 matmul path)."""
    n = x.shape[0]
    x2d = x.reshape(n, IN_FEATURES).astype(jnp.float32)
    h = jnp.tanh(x2d @ w1 + b1)
    logits = h @ w2 + b2
    return jax.nn.log_softmax(logits, axis=1)


if __name__ == "__main__":
    key = jax.random.PRNGKey(0)
    k_x, k_p = jax.random.split(key)

    # Small MNIST-like batch: (N, C, H, W) = (8, 1, 28, 28)
    x = jax.random.normal(k_x, (8, 1, 28, 28), jnp.float32)
    w1, b1, w2, b2 = init_params(k_p)
    _, _, bf16_tanh = _tpu_defaults()

    out = netfull_forward(x, w1, b1, w2, b2)
    out = jax.block_until_ready(out)
    assert out.shape == (8, OUT_FEATURES)

    # Check against a reference that uses the same matmul/epilogue recipe.
    ref_m = netfull_ref_matched(x, w1, b1, w2, b2, bf16_tanh=bf16_tanh)
    assert jnp.allclose(out, ref_m, atol=2e-2, rtol=2e-2), "mismatch vs matched reference"

    # Loose sanity check against the pure-f32 reference (bf16 mantissa noise only).
    ref_f32 = netfull_ref_f32(x, w1, b1, w2, b2)
    assert jnp.allclose(out, ref_f32, atol=5e-2, rtol=5e-2), "mismatch vs f32 reference"

    # Row log-probs must normalize: logsumexp over classes == 0.
    assert jnp.allclose(jax.scipy.special.logsumexp(out, axis=1), 0.0, atol=1e-5)

    # Exercise the un-padded / partial-final-block path (batch not a multiple of 8).
    x_odd = jax.random.normal(k_x, (50, 1, 28, 28), jnp.float32)
    out_odd = jax.block_until_ready(netfull_forward(x_odd, w1, b1, w2, b2))
    ref_odd = netfull_ref_matched(x_odd, w1, b1, w2, b2, bf16_tanh=bf16_tanh)
    assert out_odd.shape == (50, OUT_FEATURES)
    assert jnp.allclose(out_odd, ref_odd, atol=2e-2, rtol=2e-2), "mismatch on partial block"

    print("KERNEL_OK")
</pallas_src>

<mosaic_0001>
module attributes {stable_mosaic.version = 11 : i64} {
  func.func @netfull_kernel(%arg0: i32, %arg1: memref<8x784xf32, #tpu.memory_space<vmem>>, %arg2: memref<784x768xbf16, #tpu.memory_space<vmem>>, %arg3: memref<1x768xf32, #tpu.memory_space<vmem>>, %arg4: memref<768x10xbf16, #tpu.memory_space<vmem>>, %arg5: memref<1x10xf32, #tpu.memory_space<vmem>>, %arg6: memref<8x10xf32, #tpu.memory_space<vmem>>) attributes {dimension_semantics = [#tpu.dimension_semantics<parallel>], iteration_bounds = array<i64: 1>, scalar_prefetch = 0 : i64, scratch_operands = 0 : i64, tpu.core_type = #tpu.core_type<tc>, window_params = [{transform_indices = @transform_0, window_bounds = array<i64: 8, 784>}, {pipeline_mode = #tpu.pipeline_mode<synchronous>, transform_indices = @transform_1, window_bounds = array<i64: 784, 768>}, {pipeline_mode = #tpu.pipeline_mode<synchronous>, transform_indices = @transform_2, window_bounds = array<i64: 1, 768>}, {pipeline_mode = #tpu.pipeline_mode<synchronous>, transform_indices = @transform_3, window_bounds = array<i64: 768, 10>}, {pipeline_mode = #tpu.pipeline_mode<synchronous>, transform_indices = @transform_4, window_bounds = array<i64: 1, 10>}, {transform_indices = @transform_5, window_bounds = array<i64: 8, 10>}]} {
    %c0 = arith.constant 0 : index
    %c0_0 = arith.constant 0 : index
    %0 = vector.load %arg1[%c0, %c0_0] : memref<8x784xf32, #tpu.memory_space<vmem>>, vector<8x784xf32>
    %1 = arith.truncf %0 : vector<8x784xf32> to vector<8x784xbf16>
    %c0_1 = arith.constant 0 : index
    %c0_2 = arith.constant 0 : index
    %2 = vector.load %arg2[%c0_1, %c0_2] : memref<784x768xbf16, #tpu.memory_space<vmem>>, vector<784x768xbf16>
    %cst = arith.constant dense<0.000000e+00> : vector<8x768xf32>
    %3 = tpu.matmul %1, %2, %cst {dimension_numbers = #tpu.dot_dimension_numbers<[1], [0], [0], [1], [0, 0, 1, 1], [], []>} : vector<8x784xbf16>, vector<784x768xbf16>, vector<8x768xf32> -> vector<8x768xf32>
    %c0_3 = arith.constant 0 : index
    %c0_4 = arith.constant 0 : index
    %4 = vector.load %arg3[%c0_3, %c0_4] : memref<1x768xf32, #tpu.memory_space<vmem>>, vector<1x768xf32>
    %5 = vector.broadcast %4 : vector<1x768xf32> to vector<8x768xf32>
    %6 = arith.addf %3, %5 : vector<8x768xf32>
    %7 = arith.truncf %6 : vector<8x768xf32> to vector<8x768xbf16>
    %8 = math.tanh %7 : vector<8x768xbf16>
    %c0_5 = arith.constant 0 : index
    %c0_6 = arith.constant 0 : index
    %9 = vector.load %arg4[%c0_5, %c0_6] : memref<768x10xbf16, #tpu.memory_space<vmem>>, vector<768x10xbf16>
    %cst_7 = arith.constant dense<0.000000e+00> : vector<8x10xf32>
    %10 = tpu.matmul %8, %9, %cst_7 {dimension_numbers = #tpu.dot_dimension_numbers<[1], [0], [0], [1], [0, 0, 1, 1], [], []>} : vector<8x768xbf16>, vector<768x10xbf16>, vector<8x10xf32> -> vector<8x10xf32>
    %c0_8 = arith.constant 0 : index
    %c0_9 = arith.constant 0 : index
    %11 = vector.load %arg5[%c0_8, %c0_9] : memref<1x10xf32, #tpu.memory_space<vmem>>, vector<1x10xf32>
    %12 = vector.broadcast %11 : vector<1x10xf32> to vector<8x10xf32>
    %13 = arith.addf %10, %12 : vector<8x10xf32>
    %cst_10 = arith.constant dense<0xFF800000> : vector<8xf32>
    %14 = vector.multi_reduction <maximumf>, %13, %cst_10 [1] : vector<8x10xf32> to vector<8xf32>
    %15 = vector.shape_cast %14 : vector<8xf32> to vector<8x1xf32>
    %16 = vector.broadcast %15 : vector<8x1xf32> to vector<8x10xf32>
    %17 = arith.subf %13, %16 : vector<8x10xf32>
    %18 = math.exp %17 : vector<8x10xf32>
    %cst_11 = arith.constant dense<0.000000e+00> : vector<8xf32>
    %19 = vector.multi_reduction <add>, %18, %cst_11 [1] : vector<8x10xf32> to vector<8xf32>
    %20 = vector.shape_cast %19 : vector<8xf32> to vector<8x1xf32>
    %21 = math.log %20 : vector<8x1xf32>
    %22 = vector.broadcast %21 : vector<8x1xf32> to vector<8x10xf32>
    %23 = arith.subf %17, %22 : vector<8x10xf32>
    %c0_12 = arith.constant 0 : index
    %c0_13 = arith.constant 0 : index
    %24 = vector.load %arg6[%c0_12, %c0_13] : memref<8x10xf32, #tpu.memory_space<vmem>>, vector<8x10xf32>
    tpu.vector_store %arg6[%c0_12, %c0_13], %23 {strides = array<i32>} : memref<8x10xf32, #tpu.memory_space<vmem>>, vector<8x10xf32>,
    return
  }
  func.func @transform_0(%arg0: i32) -> (i32, i32) {
    %c0_i32 = arith.constant 0 : i32
    %c0_i32_0 = arith.constant 0 : i32
    return %arg0, %c0_i32 : i32, i32
  }
  func.func @transform_1(%arg0: i32) -> (i32, i32) {
    %c0_i32 = arith.constant 0 : i32
    %c0_i32_0 = arith.constant 0 : i32
    %c0_i32_1 = arith.constant 0 : i32
    return %c0_i32, %c0_i32_0 : i32, i32
  }
  func.func @transform_2(%arg0: i32) -> (i32, i32) {
    %c0_i32 = arith.constant 0 : i32
    %c0_i32_0 = arith.constant 0 : i32
    %c0_i32_1 = arith.constant 0 : i32
    return %c0_i32, %c0_i32_0 : i32, i32
  }
  func.func @transform_3(%arg0: i32) -> (i32, i32) {
    %c0_i32 = arith.constant 0 : i32
    %c0_i32_0 = arith.constant 0 : i32
    %c0_i32_1 = arith.constant 0 : i32
    return %c0_i32, %c0_i32_0 : i32, i32
  }
  func.func @transform_4(%arg0: i32) -> (i32, i32) {
    %c0_i32 = arith.constant 0 : i32
    %c0_i32_0 = arith.constant 0 : i32
    %c0_i32_1 = arith.constant 0 : i32
    return %c0_i32, %c0_i32_0 : i32, i32
  }
  func.func @transform_5(%arg0: i32) -> (i32, i32) {
    %c0_i32 = arith.constant 0 : i32
    %c0_i32_0 = arith.constant 0 : i32
    return %arg0, %c0_i32 : i32, i32
  }
}

</mosaic_0001>

<bundles_post_ra>
// kernel: _netfull_forward.1
= control target key start
LH: loop header
LB: loop body
LE: loop exit
PB: predicated region body
PF: predicated region fallthrough
CT: control target
= control target key end

     0   :  { %vm1832_vm0 = vcmask 130048   ;;  %s5023_s0 = inlined_call_operand.vmem [shape: f32[8,784], index: 0, kind: input, shape index: {}]   ;;  %s5024_s1 = inlined_call_operand.vmem [shape: bf16[784,768], index: 1, kind: input, shape index: {}]   ;;  %s5025_s2 = inlined_call_operand.vmem [shape: f32[1,768], index: 2, kind: input, shape index: {}]   ;;  %s5026_s3 = inlined_call_operand.vmem [shape: bf16[768,10], index: 3, kind: input, shape index: {}]   ;;  %s5027_s4 = inlined_call_operand.vmem [shape: f32[1,10], index: 4, kind: input, shape index: {}]   ;;  %s5028_s5 = inlined_call_operand.hbm [shape: f32[8,10], index: 5, kind: output, shape index: {}]  }
   0x1   :  { %v3331_v0 = vld [vmem:[%s5024_s1 + $0x4] ss:$24 sps:$4 sm:$0xff]   ;;  %v3335_v2 = vld [vmem:[%s5024_s1] ss:$24 sps:$4 sm:$0xff]   ;;  %v3337_v4 = vld [vmem:[%s5024_s1 + $0x34] ss:$24 sps:$4 sm:$0xff]  }
   0x2   :  { %v3333_v1 = vld [vmem:[%s5024_s1 + $0x304] ss:$24 sps:$4 sm:$0xff]   ;;  %1836 = vmatprep.subr.bf16.mxu1 %v3331_v0  ;;  %v3336_v3 = vld [vmem:[%s5024_s1 + $0x300] ss:$24 sps:$4 sm:$0xff]   ;;  %v3339_v5 = vld [vmem:[%s5024_s1 + $0x334] ss:$24 sps:$4 sm:$0xff]  }
   0x3   :  { %1877 = vmatprep.subr.bf16.mxu0 %v3333_v1  ;;  %1837 = vmatpush1.bf16.msra.mxu1 %v3335_v2  ;;  %v3341_v6 = vld [vmem:[%s5024_s1 + $0x30] ss:$24 sps:$4 sm:$0xff]   ;;  %v3343_v8 = vld [vmem:[%s5024_s1 + $0x64] ss:$24 sps:$4 sm:$0xff]   ;;  %v3347_v10 = vld [vmem:[%s5024_s1 + $0x60] ss:$24 sps:$4 sm:$0xff]  }
   0x4   :  { %1878 = vmatpush1.bf16.msra.mxu0 %v3336_v3  ;;  %1838 = vmatprep.subr.bf16.mxu1 %v3337_v4  ;;  %v3342_v7 = vld [vmem:[%s5024_s1 + $0x330] ss:$24 sps:$4 sm:$0xff]   ;;  %v3345_v9 = vld [vmem:[%s5024_s1 + $0x364] ss:$24 sps:$4 sm:$0xff]   ;;  %v3348_v11 = vld [vmem:[%s5024_s1 + $0x360] ss:$24 sps:$4 sm:$0xff]  }
   0x5   :  { %1879 = vmatprep.subr.bf16.mxu0 %v3339_v5  ;;  %v3349_v12 = vld [vmem:[%s5024_s1 + $0x94] ss:$24 sps:$4 sm:$0xff]   ;;  %v3353_v14 = vld [vmem:[%s5024_s1 + $0x90] ss:$24 sps:$4 sm:$0xff]   ;;  %v3355_v16 = vld [vmem:[%s5024_s1 + $0xc4] ss:$24 sps:$4 sm:$0xff]  }
   0x6   :  { %v3351_v13 = vld [vmem:[%s5024_s1 + $0x394] ss:$24 sps:$4 sm:$0xff]   ;;  %v3354_v15 = vld [vmem:[%s5024_s1 + $0x390] ss:$24 sps:$4 sm:$0xff]   ;;  %v3357_v17 = vld [vmem:[%s5024_s1 + $0x3c4] ss:$24 sps:$4 sm:$0xff]  }
   0x7   :  { %1839 = vmatpush1.bf16.msra.mxu1 %v3341_v6  ;;  %v3359_v18 = vld [vmem:[%s5024_s1 + $0xc0] ss:$24 sps:$4 sm:$0xff]   ;;  %v3361_v20 = vld [vmem:[%s5024_s1 + $0xf4] ss:$24 sps:$4 sm:$0xff]   ;;  %v3365_v22 = vld [vmem:[%s5024_s1 + $0xf0] ss:$24 sps:$4 sm:$0xff]  }
   0x8   :  { %1880 = vmatpush1.bf16.msra.mxu0 %v3342_v7  ;;  %1840 = vmatprep.subr.bf16.mxu1 %v3343_v8  ;;  %v3360_v19 = vld [vmem:[%s5024_s1 + $0x3c0] ss:$24 sps:$4 sm:$0xff]   ;;  %v3363_v21 = vld [vmem:[%s5024_s1 + $0x3f4] ss:$24 sps:$4 sm:$0xff]   ;;  %v3366_v23 = vld [vmem:[%s5024_s1 + $0x3f0] ss:$24 sps:$4 sm:$0xff]  }
   0x9   :  { %1881 = vmatprep.subr.bf16.mxu0 %v3345_v9  ;;  %v3367_v24 = vld [vmem:[%s5024_s1 + $0x124] ss:$24 sps:$4 sm:$0xff]   ;;  %v3371_v26 = vld [vmem:[%s5024_s1 + $0x120] ss:$24 sps:$4 sm:$0xff]   ;;  %v3373_v28 = vld [vmem:[%s5024_s1 + $0x154] ss:$24 sps:$4 sm:$0xff]  }
   0xa   :  { %v3369_v25 = vld [vmem:[%s5024_s1 + $0x424] ss:$24 sps:$4 sm:$0xff]   ;;  %v3372_v27 = vld [vmem:[%s5024_s1 + $0x420] ss:$24 sps:$4 sm:$0xff]   ;;  %v3375_v29 = vld [vmem:[%s5024_s1 + $0x454] ss:$24 sps:$4 sm:$0xff]  }
   0xb   :  { %1841 = vmatpush1.bf16.msra.mxu1 %v3347_v10  ;;  %v3377_v30 = vld [vmem:[%s5024_s1 + $0x150] ss:$24 sps:$4 sm:$0xff]   ;;  %v3379_v32 = vld [vmem:[%s5024_s1 + $0x184] ss:$24 sps:$4 sm:$0xff]   ;;  %v3383_v34 = vld [vmem:[%s5024_s1 + $0x180] ss:$24 sps:$4 sm:$0xff]  }
   0xc   :  { %1882 = vmatpush1.bf16.msra.mxu0 %v3348_v11  ;;  %1842 = vmatprep.subr.bf16.mxu1 %v3349_v12  ;;  %v3378_v31 = vld [vmem:[%s5024_s1 + $0x450] ss:$24 sps:$4 sm:$0xff]   ;;  %v3381_v33 = vld [vmem:[%s5024_s1 + $0x484] ss:$24 sps:$4 sm:$0xff]   ;;  %v3384_v35 = vld [vmem:[%s5024_s1 + $0x480] ss:$24 sps:$4 sm:$0xff]  }
   0xd   :  { %1883 = vmatprep.subr.bf16.mxu0 %v3351_v13  ;;  %v3385_v36 = vld [vmem:[%s5024_s1 + $0x1b4] ss:$24 sps:$4 sm:$0xff]   ;;  %v3389_v38 = vld [vmem:[%s5024_s1 + $0x1b0] ss:$24 sps:$4 sm:$0xff]   ;;  %v3391_v40 = vld [vmem:[%s5024_s1 + $0x1e4] ss:$24 sps:$4 sm:$0xff]  }
   0xe   :  { %v3387_v37 = vld [vmem:[%s5024_s1 + $0x4b4] ss:$24 sps:$4 sm:$0xff]   ;;  %v3390_v39 = vld [vmem:[%s5024_s1 + $0x4b0] ss:$24 sps:$4 sm:$0xff]   ;;  %v3393_v41 = vld [vmem:[%s5024_s1 + $0x4e4] ss:$24 sps:$4 sm:$0xff]  }
   0xf   :  { %1843 = vmatpush1.bf16.msra.mxu1 %v3353_v14  ;;  %v3395_v42 = vld [vmem:[%s5024_s1 + $0x1e0] ss:$24 sps:$4 sm:$0xff]   ;;  %v3397_v44 = vld [vmem:[%s5024_s1 + $0x214] ss:$24 sps:$4 sm:$0xff]   ;;  %v3401_v49 = vld [vmem:[%s5024_s1 + $0x210] ss:$24 sps:$4 sm:$0xff]  }
  0x10   :  { %1884 = vmatpush1.bf16.msra.mxu0 %v3354_v15  ;;  %1844 = vmatprep.subr.bf16.mxu1 %v3355_v16  ;;  %v3396_v43 = vld [vmem:[%s5024_s1 + $0x4e0] ss:$24 sps:$4 sm:$0xff]   ;;  %v3399_v45 = vld [vmem:[%s5024_s1 + $0x514] ss:$24 sps:$4 sm:$0xff]   ;;  %v3402_v50 = vld [vmem:[%s5024_s1 + $0x510] ss:$24 sps:$4 sm:$0xff]  }
  0x11   :  { %1885 = vmatprep.subr.bf16.mxu0 %v3357_v17  ;;  %v23_v46 = vld [vmem:[%s5023_s0 + $0x8] sm:$0xff]  ;;  %v25_v48 = vld [vmem:[%s5023_s0 + $0x18] sm:$0xff]  ;;  %v22_v5 = vld [vmem:[%s5023_s0] sm:$0xff] }
  0x12   :  { %v4033_v47 = vpack.c.bf16 %v23_v46, %v23_v46  ;;  %v4044_v51 = vpack.c.bf16 %v25_v48, %v25_v48  ;;  %v3403_v52 = vld [vmem:[%s5024_s1 + $0x244] ss:$24 sps:$4 sm:$0xff]   ;;  %v3407_v54 = vld [vmem:[%s5024_s1 + $0x240] ss:$24 sps:$4 sm:$0xff]   ;;  %v3409_v56 = vld [vmem:[%s5024_s1 + $0x274] ss:$24 sps:$4 sm:$0xff]   ;;  %v4114_v10 = vpack.c.bf16 %v22_v5, %v22_v5 }
  0x13   :  { %1845 = vmatpush1.bf16.msra.mxu1 %v3359_v18  ;;  %v3405_v53 = vld [vmem:[%s5024_s1 + $0x544] ss:$24 sps:$4 sm:$0xff]   ;;  %v3408_v55 = vld [vmem:[%s5024_s1 + $0x540] ss:$24 sps:$4 sm:$0xff]   ;;  %v3411_v57 = vld [vmem:[%s5024_s1 + $0x574] ss:$24 sps:$4 sm:$0xff]  }
  0x14   :  { %1886 = vmatpush1.bf16.msra.mxu0 %v3360_v19  ;;  %1846 = vmatprep.subr.bf16.mxu1 %v3361_v20  ;;  %v3413_v58 = vld [vmem:[%s5024_s1 + $0x270] ss:$24 sps:$4 sm:$0xff]   ;;  %v3415_v60 = vld [vmem:[%s5024_s1 + $0x2a4] ss:$24 sps:$4 sm:$0xff]   ;;  %v3419_v62 = vld [vmem:[%s5024_s1 + $0x2a0] ss:$24 sps:$4 sm:$0xff]  }
  0x15   :  { %1887 = vmatprep.subr.bf16.mxu0 %v3363_v21  ;;  %1868 = vmatprep.mubr.bf16.mxu1 %v4033_v47  ;;  %v3414_v59 = vld [vmem:[%s5024_s1 + $0x570] ss:$24 sps:$4 sm:$0xff]   ;;  %v3417_v61 = vld [vmem:[%s5024_s1 + $0x5a4] ss:$24 sps:$4 sm:$0xff]   ;;  %v3420_v63 = vld [vmem:[%s5024_s1 + $0x5a0] ss:$24 sps:$4 sm:$0xff]  }
  0x16   :  { %1909 = vmatprep.mubr.bf16.mxu0 %v4044_v51  ;;  %v3421_v0 = vld [vmem:[%s5024_s1 + $0x2d4] ss:$24 sps:$4 sm:$0xff]   ;;  %v3425_v2 = vld [vmem:[%s5024_s1 + $0x2d0] ss:$24 sps:$4 sm:$0xff]   ;;  %v3429_v4 = vld [vmem:[%s5024_s1 + $0x604] ss:$24 sps:$4 sm:$0xff]  }
  0x17   :  { %1847 = vmatpush1.bf16.msra.mxu1 %v3365_v22  ;;  %v3423_v1 = vld [vmem:[%s5024_s1 + $0x5d4] ss:$24 sps:$4 sm:$0xff]   ;;  %v3426_v3 = vld [vmem:[%s5024_s1 + $0x5d0] ss:$24 sps:$4 sm:$0xff]   ;;  %v3427_v8 = vld [vmem:[%s5024_s1 + $0x600] ss:$24 sps:$4 sm:$0xff]  }
  0x18   :  { %1888 = vmatpush1.bf16.msra.mxu0 %v3366_v23  ;;  %1848 = vmatprep.subr.bf16.mxu1 %v3367_v24  ;;  %v24_v6 = vld [vmem:[%s5023_s0 + $0x10] sm:$0xff]  ;;  %v3432_v7 = vld [vmem:[%s5024_s1 + $0xc] ss:$24 sps:$4 sm:$0xff]   ;;  %v3430_v9 = vld [vmem:[%s5024_s1 + $0x8] ss:$24 sps:$4 sm:$0xff]  }
  0x19   :  { %1889 = vmatprep.subr.bf16.mxu0 %v3369_v25  ;;  %v4116_v11 = vpack.c.bf16 %v24_v6, %v24_v6  ;;  %v3435_v12 = vld [vmem:[%s5024_s1 + $0x634] ss:$24 sps:$4 sm:$0xff]   ;;  %v3433_v14 = vld [vmem:[%s5024_s1 + $0x630] ss:$24 sps:$4 sm:$0xff]   ;;  %v3441_v16 = vld [vmem:[%s5024_s1 + $0x664] ss:$24 sps:$4 sm:$0xff]  }
  0x1a   :  { %v3438_v13 = vld [vmem:[%s5024_s1 + $0x3c] ss:$24 sps:$4 sm:$0xff]   ;;  %v3436_v15 = vld [vmem:[%s5024_s1 + $0x38] ss:$24 sps:$4 sm:$0xff]   ;;  %v3444_v17 = vld [vmem:[%s5024_s1 + $0x6c] ss:$24 sps:$4 sm:$0xff]  }
  0x1b   :  { %1849 = vmatpush1.bf16.msra.mxu1 %v3371_v26  ;;  %v3439_v18 = vld [vmem:[%s5024_s1 + $0x660] ss:$24 sps:$4 sm:$0xff]   ;;  %v3447_v20 = vld [vmem:[%s5024_s1 + $0x694] ss:$24 sps:$4 sm:$0xff]   ;;  %v3445_v22 = vld [vmem:[%s5024_s1 + $0x690] ss:$24 sps:$4 sm:$0xff]  }
  0x1c   :  { %1890 = vmatpush1.bf16.msra.mxu0 %v3372_v27  ;;  %1850 = vmatprep.subr.bf16.mxu1 %v3373_v28  ;;  %v3442_v19 = vld [vmem:[%s5024_s1 + $0x68] ss:$24 sps:$4 sm:$0xff]   ;;  %v3450_v21 = vld [vmem:[%s5024_s1 + $0x9c] ss:$24 sps:$4 sm:$0xff]   ;;  %v3448_v23 = vld [vmem:[%s5024_s1 + $0x98] ss:$24 sps:$4 sm:$0xff]  }
  0x1d   :  { %1891 = vmatprep.subr.bf16.mxu0 %v3375_v29  ;;  %v3453_v24 = vld [vmem:[%s5024_s1 + $0x6c4] ss:$24 sps:$4 sm:$0xff]   ;;  %v3451_v26 = vld [vmem:[%s5024_s1 + $0x6c0] ss:$24 sps:$4 sm:$0xff]   ;;  %v3459_v28 = vld [vmem:[%s5024_s1 + $0x6f4] ss:$24 sps:$4 sm:$0xff]  }
  0x1e   :  { %v3456_v25 = vld [vmem:[%s5024_s1 + $0xcc] ss:$24 sps:$4 sm:$0xff]   ;;  %v3454_v27 = vld [vmem:[%s5024_s1 + $0xc8] ss:$24 sps:$4 sm:$0xff]   ;;  %v3462_v29 = vld [vmem:[%s5024_s1 + $0xfc] ss:$24 sps:$4 sm:$0xff]  }
  0x1f   :  { %1851 = vmatpush1.bf16.msra.mxu1 %v3377_v30  ;;  %v3457_v30 = vld [vmem:[%s5024_s1 + $0x6f0] ss:$24 sps:$4 sm:$0xff]   ;;  %v3483_v46 = vld [vmem:[%s5024_s1 + $0x7b4] ss:$24 sps:$4 sm:$0xff]   ;;  %v3511_v6 = vld [vmem:[%s5024_s1 + $0x8a0] ss:$24 sps:$4 sm:$0xff]  }
  0x20   :  { %1892 = vmatpush1.bf16.msra.mxu0 %v3378_v31  ;;  %1852 = vmatprep.subr.bf16.mxu1 %v3379_v32  ;;  %v3460_v31 = vld [vmem:[%s5024_s1 + $0xf8] ss:$24 sps:$4 sm:$0xff]   ;;  %v3465_v32 = vld [vmem:[%s5024_s1 + $0x724] ss:$24 sps:$4 sm:$0xff]  }
  0x21   :  { %1893 = vmatprep.subr.bf16.mxu0 %v3381_v33  ;;  %v3468_v33 = vld [vmem:[%s5024_s1 + $0x12c] ss:$24 sps:$4 sm:$0xff]   ;;  %v3486_v48 = vld [vmem:[%s5024_s1 + $0x1bc] ss:$24 sps:$4 sm:$0xff]  }
  0x22   :  { %v3516_v5 = vld [vmem:[%s5024_s1 + $0x2ac] ss:$24 sps:$4 sm:$0xff]  }
  0x23   :  { %1853 = vmatpush1.bf16.msra.mxu1 %v3383_v34  ;;  %v27_v34 = vld [vmem:[%s5023_s0 + $0x28] sm:$0xff] }
  0x24   :  { %1894 = vmatpush1.bf16.msra.mxu0 %v3384_v35  ;;  %1854 = vmatprep.subr.bf16.mxu1 %v3385_v36  ;;  %v4190_v35 = vpack.c.bf16 %v27_v34, %v27_v34  ;;  %v3463_v36 = vld [vmem:[%s5024_s1 + $0x720] ss:$24 sps:$4 sm:$0xff]   ;;  %v3549_v34 = vld [vmem:[%s5024_s1 + $0x3fc] ss:$24 sps:$4 sm:$0xff]  }
  0x25   :  { %1895 = vmatprep.subr.bf16.mxu0 %v3387_v37  ;;  %v3466_v37 = vld [vmem:[%s5024_s1 + $0x128] ss:$24 sps:$4 sm:$0xff]  }
  0x27   :  { %1855 = vmatpush1.bf16.msra.mxu1 %v3389_v38  ;;  %v3471_v38 = vld [vmem:[%s5024_s1 + $0x754] ss:$24 sps:$4 sm:$0xff]  }
  0x28   :  { %1896 = vmatpush1.bf16.msra.mxu0 %v3390_v39  ;;  %1856 = vmatprep.subr.bf16.mxu1 %v3391_v40  ;;  %v3474_v39 = vld [vmem:[%s5024_s1 + $0x15c] ss:$24 sps:$4 sm:$0xff]   ;;  %v3469_v40 = vld [vmem:[%s5024_s1 + $0x750] ss:$24 sps:$4 sm:$0xff]  }
  0x29   :  { %1897 = vmatprep.subr.bf16.mxu0 %v3393_v41  ;;  %v3472_v41 = vld [vmem:[%s5024_s1 + $0x158] ss:$24 sps:$4 sm:$0xff]  }
  0x2b   :  { %1857 = vmatpush1.bf16.msra.mxu1 %v3395_v42  ;;  %v3477_v42 = vld [vmem:[%s5024_s1 + $0x784] ss:$24 sps:$4 sm:$0xff]  }
  0x2c   :  { %1898 = vmatpush1.bf16.msra.mxu0 %v3396_v43  ;;  %1858 = vmatprep.subr.bf16.mxu1 %v3397_v44  ;;  %v3480_v43 = vld [vmem:[%s5024_s1 + $0x18c] ss:$24 sps:$4 sm:$0xff]   ;;  %v3475_v44 = vld [vmem:[%s5024_s1 + $0x780] ss:$24 sps:$4 sm:$0xff]  }
  0x2d   :  { %1899 = vmatprep.subr.bf16.mxu0 %v3399_v45  ;;  %v3478_v45 = vld [vmem:[%s5024_s1 + $0x188] ss:$24 sps:$4 sm:$0xff]  }
  0x2f   :  { %1859 = vmatpush1.bf16.msra.mxu1 %v3401_v49  ;;  %v3481_v49 = vld [vmem:[%s5024_s1 + $0x7b0] ss:$24 sps:$4 sm:$0xff]  }
  0x30   :  { %1900 = vmatpush1.bf16.msra.mxu0 %v3402_v50  ;;  %1860 = vmatprep.subr.bf16.mxu1 %v3403_v52  ;;  %v3484_v50 = vld [vmem:[%s5024_s1 + $0x1b8] ss:$24 sps:$4 sm:$0xff]   ;;  %v3489_v52 = vld [vmem:[%s5024_s1 + $0x7e4] ss:$24 sps:$4 sm:$0xff]  }
  0x31   :  { %1901 = vmatprep.subr.bf16.mxu0 %v3405_v53  ;;  %v3492_v53 = vld [vmem:[%s5024_s1 + $0x1ec] ss:$24 sps:$4 sm:$0xff]  }
  0x33   :  { %1861 = vmatpush1.bf16.msra.mxu1 %v3407_v54  ;;  %v3487_v54 = vld [vmem:[%s5024_s1 + $0x7e0] ss:$24 sps:$4 sm:$0xff]  }
  0x34   :  { %1902 = vmatpush1.bf16.msra.mxu0 %v3408_v55  ;;  %1862 = vmatprep.subr.bf16.mxu1 %v3409_v56  ;;  %v3490_v55 = vld [vmem:[%s5024_s1 + $0x1e8] ss:$24 sps:$4 sm:$0xff]   ;;  %v3495_v56 = vld [vmem:[%s5024_s1 + $0x814] ss:$24 sps:$4 sm:$0xff]  }
  0x35   :  { %1903 = vmatprep.subr.bf16.mxu0 %v3411_v57  ;;  %v3498_v57 = vld [vmem:[%s5024_s1 + $0x21c] ss:$24 sps:$4 sm:$0xff]  }
  0x37   :  { %1863 = vmatpush1.bf16.msra.mxu1 %v3413_v58  ;;  %v3493_v58 = vld [vmem:[%s5024_s1 + $0x810] ss:$24 sps:$4 sm:$0xff]  }
  0x38   :  { %1904 = vmatpush1.bf16.msra.mxu0 %v3414_v59  ;;  %1864 = vmatprep.subr.bf16.mxu1 %v3415_v60  ;;  %v3496_v59 = vld [vmem:[%s5024_s1 + $0x218] ss:$24 sps:$4 sm:$0xff]   ;;  %v3501_v60 = vld [vmem:[%s5024_s1 + $0x844] ss:$24 sps:$4 sm:$0xff]  }
  0x39   :  { %1905 = vmatprep.subr.bf16.mxu0 %v3417_v61  ;;  %v3504_v61 = vld [vmem:[%s5024_s1 + $0x24c] ss:$24 sps:$4 sm:$0xff]  }
  0x3b   :  { %1865 = vmatpush1.bf16.msra.mxu1 %v3419_v62  ;;  %v3499_v62 = vld [vmem:[%s5024_s1 + $0x840] ss:$24 sps:$4 sm:$0xff]  }
  0x3c   :  { %1906 = vmatpush1.bf16.msra.mxu0 %v3420_v63  ;;  %1866 = vmatprep.subr.bf16.mxu1 %v3421_v0  ;;  %v3502_v63 = vld [vmem:[%s5024_s1 + $0x248] ss:$24 sps:$4 sm:$0xff]   ;;  %v3507_v0 = vld [vmem:[%s5024_s1 + $0x874] ss:$24 sps:$4 sm:$0xff]  }
  0x3d   :  { %1907 = vmatprep.subr.bf16.mxu0 %v3423_v1  ;;  %v3510_v1 = vld [vmem:[%s5024_s1 + $0x27c] ss:$24 sps:$4 sm:$0xff]  }
  0x3f   :  { %1867 = vmatpush1.bf16.msra.mxu1 %v3425_v2  ;;  %v3505_v2 = vld [vmem:[%s5024_s1 + $0x870] ss:$24 sps:$4 sm:$0xff]  }
  0x40   :  { %1908 = vmatpush1.bf16.msra.mxu0 %v3426_v3  ;;  %2000 = vmatprep.subr.bf16.mxu1 %v3432_v7  ;;  %v3508_v3 = vld [vmem:[%s5024_s1 + $0x278] ss:$24 sps:$4 sm:$0xff]   ;;  %v3514_v7 = vld [vmem:[%s5024_s1 + $0x2a8] ss:$24 sps:$4 sm:$0xff]  }
  0x41   :  { %1918 = vmatprep.subr.bf16.mxu0 %v3429_v4  ;;  %v3513_v4 = vld [vmem:[%s5024_s1 + $0x8a4] ss:$24 sps:$4 sm:$0xff]  }
  0x42   :  { %1869 = vmatmul.mubr.bf16.vlgmr.msra.gmra.mrb[0].mxu1 %v4114_v10 }
  0x43   :  { %1910 = vmatmul.mubr.bf16.vlgmr.msra.gmra.mrb[0].mxu0 %v4116_v11  ;;  %2001 = vmatpush1.bf16.msra.mxu1 %v3430_v9  ;;  %v3522_v9 = vld [vmem:[%s5024_s1 + $0x2dc] ss:$24 sps:$4 sm:$0xff]  }
  0x44   :  { %1919 = vmatpush1.bf16.msra.mxu0 %v3427_v8  ;;  %2002 = vmatprep.subr.bf16.mxu1 %v3438_v13  ;;  %v3519_v8 = vld [vmem:[%s5024_s1 + $0x8d4] ss:$24 sps:$4 sm:$0xff]   ;;  %v3520_v13 = vld [vmem:[%s5024_s1 + $0x2d8] ss:$24 sps:$4 sm:$0xff]  }
  0x45   :  { %1920 = vmatprep.subr.bf16.mxu0 %v3435_v12  ;;  %2032 = vmatprep.mubr.bf16.mxu1 %v4033_v47  ;;  %v3517_v12 = vld [vmem:[%s5024_s1 + $0x8d0] ss:$24 sps:$4 sm:$0xff]  }
  0x46   :  { %1950 = vmatprep.mubr.bf16.mxu0 %v4190_v35 }
  0x47   :  { %2003 = vmatpush1.bf16.msra.mxu1 %v3436_v15  ;;  %v3525_v15 = vld [vmem:[%s5024_s1 + $0x904] ss:$24 sps:$4 sm:$0xff]  }
  0x48   :  { %1921 = vmatpush1.bf16.msra.mxu0 %v3433_v14  ;;  %2004 = vmatprep.subr.bf16.mxu1 %v3444_v17  ;;  %v26_v14 = vld [vmem:[%s5023_s0 + $0x20] sm:$0xff] }
  0x49   :  { %1922 = vmatprep.subr.bf16.mxu0 %v3441_v16  ;;  %v3528_v16 = vld [vmem:[%s5024_s1 + $0x30c] ss:$24 sps:$4 sm:$0xff]   ;;  %v4316_v17 = vpack.c.bf16 %v26_v14, %v26_v14  ;;  %v3609_v14 = vld [vmem:[%s5024_s1 + $0x5dc] ss:$24 sps:$4 sm:$0xff]  }
  0x4b   :  { %2005 = vmatpush1.bf16.msra.mxu1 %v3442_v19  ;;  %v3526_v19 = vld [vmem:[%s5024_s1 + $0x308] ss:$24 sps:$4 sm:$0xff]  }
  0x4c   :  { %1923 = vmatpush1.bf16.msra.mxu0 %v3439_v18  ;;  %2006 = vmatprep.subr.bf16.mxu1 %v3450_v21  ;;  %v3523_v18 = vld [vmem:[%s5024_s1 + $0x900] ss:$24 sps:$4 sm:$0xff]   ;;  %v3540_v21 = vld [vmem:[%s5024_s1 + $0x90c] ss:$24 sps:$4 sm:$0xff]  }
  0x4d   :  { %1924 = vmatprep.subr.bf16.mxu0 %v3447_v20  ;;  %v3531_v20 = vld [vmem:[%s5024_s1 + $0x33c] ss:$24 sps:$4 sm:$0xff]  }
  0x4f   :  { %2007 = vmatpush1.bf16.msra.mxu1 %v3448_v23  ;;  %v3534_v23 = vld [vmem:[%s5024_s1 + $0x36c] ss:$24 sps:$4 sm:$0xff]  }
  0x50   :  { %1925 = vmatpush1.bf16.msra.mxu0 %v3445_v22  ;;  %2008 = vmatprep.subr.bf16.mxu1 %v3456_v25  ;;  %v3529_v22 = vld [vmem:[%s5024_s1 + $0x338] ss:$24 sps:$4 sm:$0xff]   ;;  %v3532_v25 = vld [vmem:[%s5024_s1 + $0x368] ss:$24 sps:$4 sm:$0xff]  }
  0x51   :  { %1926 = vmatprep.subr.bf16.mxu0 %v3453_v24  ;;  %v3860_v24 = vmov 0  }
  0x53   :  { %2009 = vmatpush1.bf16.msra.mxu1 %v3454_v27  ;;  %v3537_v27 = vld [vmem:[%s5024_s1 + $0x39c] ss:$24 sps:$4 sm:$0xff]  }
  0x54   :  { %1927 = vmatpush1.bf16.msra.mxu0 %v3451_v26  ;;  %2010 = vmatprep.subr.bf16.mxu1 %v3462_v29  ;;  %v28_v26 = vld [vmem:[%s5023_s0 + $0x30] sm:$0xff] }
  0x55   :  { %1928 = vmatprep.subr.bf16.mxu0 %v3459_v28  ;;  %v4349_v28 = vpack.c.bf16 %v28_v26, %v28_v26  ;;  %v3535_v29 = vld [vmem:[%s5024_s1 + $0x398] ss:$24 sps:$4 sm:$0xff]  }
  0x56   :  { %v3619_v26 = vld [vmem:[%s5024_s1 + $0x638] ss:$24 sps:$4 sm:$0xff]  }
  0x57   :  { %2011 = vmatpush1.bf16.msra.mxu1 %v3460_v31  ;;  %v3543_v31 = vld [vmem:[%s5024_s1 + $0x3cc] ss:$24 sps:$4 sm:$0xff]  }
  0x58   :  { %1929 = vmatpush1.bf16.msra.mxu0 %v3457_v30  ;;  %2012 = vmatprep.subr.bf16.mxu1 %v3468_v33  ;;  %v3538_v30 = vld [vmem:[%s5024_s1 + $0x908] ss:$24 sps:$4 sm:$0xff]  }
  0x59   :  { %1930 = vmatprep.subr.bf16.mxu0 %v3465_v32  ;;  %v3546_v32 = vld [vmem:[%s5024_s1 + $0x14] ss:$24 sps:$4 sm:$0xff]   ;;  %v3541_v33 = vld [vmem:[%s5024_s1 + $0x3c8] ss:$24 sps:$4 sm:$0xff]  }
  0x5b   :  { %2013 = vmatpush1.bf16.msra.mxu1 %v3466_v37  ;;  %v3547_v37 = vld [vmem:[%s5024_s1 + $0x3f8] ss:$24 sps:$4 sm:$0xff]  }
  0x5c   :  { %1931 = vmatpush1.bf16.msra.mxu0 %v3463_v36  ;;  %2014 = vmatprep.subr.bf16.mxu1 %v3474_v39  ;;  %v3544_v36 = vld [vmem:[%s5024_s1 + $0x10] ss:$24 sps:$4 sm:$0xff]   ;;  %v3555_v39 = vld [vmem:[%s5024_s1 + $0x42c] ss:$24 sps:$4 sm:$0xff]  }
  0x5d   :  { %1932 = vmatprep.subr.bf16.mxu0 %v3471_v38  ;;  %v3552_v38 = vld [vmem:[%s5024_s1 + $0x44] ss:$24 sps:$4 sm:$0xff]  }
  0x5f   :  { %2015 = vmatpush1.bf16.msra.mxu1 %v3472_v41  ;;  %v3553_v41 = vld [vmem:[%s5024_s1 + $0x428] ss:$24 sps:$4 sm:$0xff]  }
  0x60   :  { %1933 = vmatpush1.bf16.msra.mxu0 %v3469_v40  ;;  %2016 = vmatprep.subr.bf16.mxu1 %v3480_v43  ;;  %v3550_v40 = vld [vmem:[%s5024_s1 + $0x40] ss:$24 sps:$4 sm:$0xff]   ;;  %v3561_v43 = vld [vmem:[%s5024_s1 + $0x45c] ss:$24 sps:$4 sm:$0xff]  }
  0x61   :  { %1934 = vmatprep.subr.bf16.mxu0 %v3477_v42  ;;  %v3558_v42 = vld [vmem:[%s5024_s1 + $0x74] ss:$24 sps:$4 sm:$0xff]  }
  0x63   :  { %2017 = vmatpush1.bf16.msra.mxu1 %v3478_v45  ;;  %v3559_v45 = vld [vmem:[%s5024_s1 + $0x458] ss:$24 sps:$4 sm:$0xff]  }
  0x64   :  { %1935 = vmatpush1.bf16.msra.mxu0 %v3475_v44  ;;  %2018 = vmatprep.subr.bf16.mxu1 %v3486_v48  ;;  %v3556_v44 = vld [vmem:[%s5024_s1 + $0x70] ss:$24 sps:$4 sm:$0xff]   ;;  %v3562_v48 = vld [vmem:[%s5024_s1 + $0xa0] ss:$24 sps:$4 sm:$0xff]  }
  0x65   :  { %1936 = vmatprep.subr.bf16.mxu0 %v3483_v46  ;;  %v3564_v46 = vld [vmem:[%s5024_s1 + $0xa4] ss:$24 sps:$4 sm:$0xff]  }
  0x67   :  { %2019 = vmatpush1.bf16.msra.mxu1 %v3484_v50  ;;  %v3570_v50 = vld [vmem:[%s5024_s1 + $0xd4] ss:$24 sps:$4 sm:$0xff]  }
  0x68   :  { %1937 = vmatpush1.bf16.msra.mxu0 %v3481_v49  ;;  %2020 = vmatprep.subr.bf16.mxu1 %v3492_v53  ;;  %v3565_v49 = vld [vmem:[%s5024_s1 + $0x488] ss:$24 sps:$4 sm:$0xff]  }
  0x69   :  { %1938 = vmatprep.subr.bf16.mxu0 %v3489_v52  ;;  %v3573_v52 = vld [vmem:[%s5024_s1 + $0x4bc] ss:$24 sps:$4 sm:$0xff]   ;;  %v3568_v53 = vld [vmem:[%s5024_s1 + $0xd0] ss:$24 sps:$4 sm:$0xff]  }
  0x6b   :  { %2021 = vmatpush1.bf16.msra.mxu1 %v3490_v55  ;;  %v3576_v55 = vld [vmem:[%s5024_s1 + $0x104] ss:$24 sps:$4 sm:$0xff]  }
  0x6c   :  { %1939 = vmatpush1.bf16.msra.mxu0 %v3487_v54  ;;  %2022 = vmatprep.subr.bf16.mxu1 %v3498_v57  ;;  %v3571_v54 = vld [vmem:[%s5024_s1 + $0x4b8] ss:$24 sps:$4 sm:$0xff]  }
  0x6d   :  { %1940 = vmatprep.subr.bf16.mxu0 %v3495_v56  ;;  %v3579_v56 = vld [vmem:[%s5024_s1 + $0x4ec] ss:$24 sps:$4 sm:$0xff]   ;;  %v3574_v57 = vld [vmem:[%s5024_s1 + $0x100] ss:$24 sps:$4 sm:$0xff]  }
  0x6f   :  { %2023 = vmatpush1.bf16.msra.mxu1 %v3496_v59  ;;  %v3582_v59 = vld [vmem:[%s5024_s1 + $0x134] ss:$24 sps:$4 sm:$0xff]  }
  0x70   :  { %1941 = vmatpush1.bf16.msra.mxu0 %v3493_v58  ;;  %2024 = vmatprep.subr.bf16.mxu1 %v3504_v61  ;;  %v3577_v58 = vld [vmem:[%s5024_s1 + $0x4e8] ss:$24 sps:$4 sm:$0xff]  }
  0x71   :  { %1942 = vmatprep.subr.bf16.mxu0 %v3501_v60  ;;  %v3585_v60 = vld [vmem:[%s5024_s1 + $0x51c] ss:$24 sps:$4 sm:$0xff]   ;;  %v3580_v61 = vld [vmem:[%s5024_s1 + $0x130] ss:$24 sps:$4 sm:$0xff]  }
  0x73   :  { %2025 = vmatpush1.bf16.msra.mxu1 %v3502_v63  ;;  %v3588_v63 = vld [vmem:[%s5024_s1 + $0x164] ss:$24 sps:$4 sm:$0xff]  }
  0x74   :  { %1943 = vmatpush1.bf16.msra.mxu0 %v3499_v62  ;;  %2026 = vmatprep.subr.bf16.mxu1 %v3510_v1  ;;  %v3583_v62 = vld [vmem:[%s5024_s1 + $0x518] ss:$24 sps:$4 sm:$0xff]  }
  0x75   :  { %1944 = vmatprep.subr.bf16.mxu0 %v3507_v0  ;;  %v3591_v0 = vld [vmem:[%s5024_s1 + $0x54c] ss:$24 sps:$4 sm:$0xff]   ;;  %v3586_v1 = vld [vmem:[%s5024_s1 + $0x160] ss:$24 sps:$4 sm:$0xff]  }
  0x77   :  { %2027 = vmatpush1.bf16.msra.mxu1 %v3508_v3  ;;  %v3594_v3 = vld [vmem:[%s5024_s1 + $0x194] ss:$24 sps:$4 sm:$0xff]  }
  0x78   :  { %1945 = vmatpush1.bf16.msra.mxu0 %v3505_v2  ;;  %2028 = vmatprep.subr.bf16.mxu1 %v3516_v5  ;;  %v3589_v2 = vld [vmem:[%s5024_s1 + $0x548] ss:$24 sps:$4 sm:$0xff]  }
  0x79   :  { %1946 = vmatprep.subr.bf16.mxu0 %v3513_v4  ;;  %v3597_v4 = vld [vmem:[%s5024_s1 + $0x57c] ss:$24 sps:$4 sm:$0xff]   ;;  %v3592_v5 = vld [vmem:[%s5024_s1 + $0x190] ss:$24 sps:$4 sm:$0xff]  }
  0x7b   :  { %2029 = vmatpush1.bf16.msra.mxu1 %v3514_v7  ;;  %v3600_v7 = vld [vmem:[%s5024_s1 + $0x1c4] ss:$24 sps:$4 sm:$0xff]  }
  0x7c   :  { %1947 = vmatpush1.bf16.msra.mxu0 %v3511_v6  ;;  %2030 = vmatprep.subr.bf16.mxu1 %v3522_v9  ;;  %v3595_v6 = vld [vmem:[%s5024_s1 + $0x578] ss:$24 sps:$4 sm:$0xff]  }
  0x7d   :  { %1948 = vmatprep.subr.bf16.mxu0 %v3519_v8  ;;  %v3603_v8 = vld [vmem:[%s5024_s1 + $0x5ac] ss:$24 sps:$4 sm:$0xff]   ;;  %v3598_v9 = vld [vmem:[%s5024_s1 + $0x1c0] ss:$24 sps:$4 sm:$0xff]  }
  0x7f   :  { %2031 = vmatpush1.bf16.msra.mxu1 %v3520_v13  ;;  %v3606_v13 = vld [vmem:[%s5024_s1 + $0x1f4] ss:$24 sps:$4 sm:$0xff]  }
  0x80   :  { %1949 = vmatpush1.bf16.msra.mxu0 %v3517_v12  ;;  %2041 = vmatprep.subr.bf16.mxu1 %v3528_v16  ;;  %v3601_v12 = vld [vmem:[%s5024_s1 + $0x5a8] ss:$24 sps:$4 sm:$0xff]   ;;  %v3607_v16 = vld [vmem:[%s5024_s1 + $0x5d8] ss:$24 sps:$4 sm:$0xff]  }
  0x81   :  { %1959 = vmatprep.subr.bf16.mxu0 %v3525_v15  ;;  %v3604_v15 = vld [vmem:[%s5024_s1 + $0x1f0] ss:$24 sps:$4 sm:$0xff]  }
  0x82   :  { %2033 = vmatmul.mubr.bf16.vlgmr.msra.gmra.mrb[4].mxu1 %v4114_v10 }
  0x83   :  { %1951 = vmatmul.mubr.bf16.vlgmr.msra.gmra.mrb[0].mxu0 %v4316_v17  ;;  %2042 = vmatpush1.bf16.msra.mxu1 %v3526_v19  ;;  %v3615_v19 = vld [vmem:[%s5024_s1 + $0x60c] ss:$24 sps:$4 sm:$0xff]  }
  0x84   :  { %1960 = vmatpush1.bf16.msra.mxu0 %v3523_v18  ;;  %2043 = vmatprep.subr.bf16.mxu1 %v3531_v20  ;;  %v3612_v18 = vld [vmem:[%s5024_s1 + $0x224] ss:$24 sps:$4 sm:$0xff]   ;;  %v3610_v20 = vld [vmem:[%s5024_s1 + $0x220] ss:$24 sps:$4 sm:$0xff]  }
  0x85   :  { %1991 = vmatprep.mubr.bf16.mxu0 %v3860_v24  ;;  %2123 = vmatprep.subr.bf16.mxu0 %v3540_v21  ;;  %v3613_v21 = vld [vmem:[%s5024_s1 + $0x608] ss:$24 sps:$4 sm:$0xff]  }
  0x86   :  { %2073 = vmatprep.mubr.bf16.mxu1 %v4044_v51 }
  0x87   :  { %2044 = vmatpush1.bf16.msra.mxu1 %v3529_v22  ;;  %v3618_v22 = vld [vmem:[%s5024_s1 + $0x254] ss:$24 sps:$4 sm:$0xff]  }
  0x88   :  { %2045 = vmatprep.subr.bf16.mxu1 %v3534_v23  ;;  %v3621_v23 = vld [vmem:[%s5024_s1 + $0x63c] ss:$24 sps:$4 sm:$0xff]  }
  0x8b   :  { %2046 = vmatpush1.bf16.msra.mxu1 %v3532_v25  ;;  %v3616_v25 = vld [vmem:[%s5024_s1 + $0x250] ss:$24 sps:$4 sm:$0xff]  }
  0x8c   :  { %2047 = vmatprep.subr.bf16.mxu1 %v3537_v27  ;;  %v3624_v27 = vld [vmem:[%s5024_s1 + $0x284] ss:$24 sps:$4 sm:$0xff]  }
  0x8f   :  { %3173 = vmatmul.mubr.msk.bf16.vlgmr.msra.gmra.mrb[0].mxu0 %vm1832_vm0, %v4349_v28  ;;  %2048 = vmatpush1.bf16.msra.mxu1 %v3535_v29  ;;  %v3627_v29 = vld [vmem:[%s5024_s1 + $0x66c] ss:$24 sps:$4 sm:$0xff]  }
  0x90   :  { %2124 = vmatpush1.bf16.msra.mxu0 %v3538_v30  ;;  %2049 = vmatprep.subr.bf16.mxu1 %v3543_v31  ;;  %v3622_v30 = vld [vmem:[%s5024_s1 + $0x280] ss:$24 sps:$4 sm:$0xff]  }
  0x91   :  { %2155 = vmatprep.mubr.bf16.mxu0 %v3860_v24  ;;  %2164 = vmatprep.subr.bf16.mxu0 %v3546_v32  ;;  %v3625_v31 = vld [vmem:[%s5024_s1 + $0x668] ss:$24 sps:$4 sm:$0xff]   ;;  %v3630_v32 = vld [vmem:[%s5024_s1 + $0x2b4] ss:$24 sps:$4 sm:$0xff]  }
  0x93   :  { %2050 = vmatpush1.bf16.msra.mxu1 %v3541_v33  ;;  %v3633_v33 = vld [vmem:[%s5024_s1 + $0x69c] ss:$24 sps:$4 sm:$0xff]  }
  0x94   :  { %2051 = vmatprep.subr.bf16.mxu1 %v3549_v34  ;;  %v3628_v34 = vld [vmem:[%s5024_s1 + $0x2b0] ss:$24 sps:$4 sm:$0xff]  }
  0x97   :  { %3174 = vmatmul.mubr.msk.bf16.vlgmr.msra.gmra.mrb[4].mxu0 %vm1832_vm0, %v4349_v28  ;;  %2052 = vmatpush1.bf16.msra.mxu1 %v3547_v37  ;;  %v3636_v37 = vld [vmem:[%s5024_s1 + $0x2e4] ss:$24 sps:$4 sm:$0xff]  }
  0x98   :  { %2165 = vmatpush1.bf16.msra.mxu0 %v3544_v36  ;;  %2053 = vmatprep.subr.bf16.mxu1 %v3555_v39  ;;  %v3631_v36 = vld [vmem:[%s5024_s1 + $0x698] ss:$24 sps:$4 sm:$0xff]  }
  0x99   :  { %2166 = vmatprep.subr.bf16.mxu0 %v3552_v38  ;;  %2196 = vmatprep.mubr.bf16.mxu0 %v4033_v47  ;;  %v3567_v47 = vld [vmem:[%s5024_s1 + $0x48c] ss:$24 sps:$4 sm:$0xff]   ;;  %v3634_v39 = vld [vmem:[%s5024_s1 + $0x2e0] ss:$24 sps:$4 sm:$0xff]  }
  0x9a   :  { %v3639_v38 = vld [vmem:[%s5024_s1 + $0x6cc] ss:$24 sps:$4 sm:$0xff]  }
  0x9b   :  { %2054 = vmatpush1.bf16.msra.mxu1 %v3553_v41  ;;  %v3642_v41 = vld [vmem:[%s5024_s1 + $0x314] ss:$24 sps:$4 sm:$0xff]  }
  0x9c   :  { %2167 = vmatpush1.bf16.msra.mxu0 %v3550_v40  ;;  %2055 = vmatprep.subr.bf16.mxu1 %v3561_v43  ;;  %v3637_v40 = vld [vmem:[%s5024_s1 + $0x6c8] ss:$24 sps:$4 sm:$0xff]  }
  0x9d   :  { %2168 = vmatprep.subr.bf16.mxu0 %v3558_v42  ;;  %v3645_v42 = vld [vmem:[%s5024_s1 + $0x6fc] ss:$24 sps:$4 sm:$0xff]   ;;  %v3640_v43 = vld [vmem:[%s5024_s1 + $0x310] ss:$24 sps:$4 sm:$0xff]  }
  0x9f   :  { %2056 = vmatpush1.bf16.msra.mxu1 %v3559_v45  ;;  %v3648_v45 = vld [vmem:[%s5024_s1 + $0x344] ss:$24 sps:$4 sm:$0xff]  }
  0xa0   :  { %2169 = vmatpush1.bf16.msra.mxu0 %v3556_v44  ;;  %2057 = vmatprep.subr.bf16.mxu1 %v3567_v47  ;;  %v3643_v44 = vld [vmem:[%s5024_s1 + $0x6f8] ss:$24 sps:$4 sm:$0xff]  }
  0xa1   :  { %2170 = vmatprep.subr.bf16.mxu0 %v3564_v46  ;;  %v3651_v46 = vld [vmem:[%s5024_s1 + $0x72c] ss:$24 sps:$4 sm:$0xff]   ;;  %v3646_v47 = vld [vmem:[%s5024_s1 + $0x340] ss:$24 sps:$4 sm:$0xff]  }
  0xa3   :  { %2058 = vmatpush1.bf16.msra.mxu1 %v3565_v49  ;;  %v3654_v49 = vld [vmem:[%s5024_s1 + $0x374] ss:$24 sps:$4 sm:$0xff]  }
  0xa4   :  { %2171 = vmatpush1.bf16.msra.mxu0 %v3562_v48  ;;  %2059 = vmatprep.subr.bf16.mxu1 %v3573_v52  ;;  %v3649_v48 = vld [vmem:[%s5024_s1 + $0x728] ss:$24 sps:$4 sm:$0xff]   ;;  %v3655_v52 = vld [vmem:[%s5024_s1 + $0x758] ss:$24 sps:$4 sm:$0xff]  }
  0xa5   :  { %2172 = vmatprep.subr.bf16.mxu0 %v3570_v50  ;;  %v3652_v50 = vld [vmem:[%s5024_s1 + $0x370] ss:$24 sps:$4 sm:$0xff]  }
  0xa7   :  { %2060 = vmatpush1.bf16.msra.mxu1 %v3571_v54  ;;  %v3663_v54 = vld [vmem:[%s5024_s1 + $0x78c] ss:$24 sps:$4 sm:$0xff]  }
  0xa8   :  { %2173 = vmatpush1.bf16.msra.mxu0 %v3568_v53  ;;  %2061 = vmatprep.subr.bf16.mxu1 %v3579_v56  ;;  %v3660_v53 = vld [vmem:[%s5024_s1 + $0x3a4] ss:$24 sps:$4 sm:$0xff]   ;;  %v3666_v56 = vld [vmem:[%s5024_s1 + $0x3d4] ss:$24 sps:$4 sm:$0xff]  }
  0xa9   :  { %2174 = vmatprep.subr.bf16.mxu0 %v3576_v55  ;;  %v3658_v55 = vld [vmem:[%s5024_s1 + $0x3a0] ss:$24 sps:$4 sm:$0xff]  }
  0xab   :  { %2062 = vmatpush1.bf16.msra.mxu1 %v3577_v58  ;;  %v3664_v58 = vld [vmem:[%s5024_s1 + $0x3d0] ss:$24 sps:$4 sm:$0xff]  }
  0xac   :  { %2175 = vmatpush1.bf16.msra.mxu0 %v3574_v57  ;;  %2063 = vmatprep.subr.bf16.mxu1 %v3585_v60  ;;  %v3669_v57 = vld [vmem:[%s5024_s1 + $0x7bc] ss:$24 sps:$4 sm:$0xff]  }
  0xad   :  { %2176 = vmatprep.subr.bf16.mxu0 %v3582_v59  ;;  %v3667_v59 = vld [vmem:[%s5024_s1 + $0x7b8] ss:$24 sps:$4 sm:$0xff]   ;;  %v3672_v60 = vld [vmem:[%s5024_s1 + $0x404] ss:$24 sps:$4 sm:$0xff]  }
  0xaf   :  { %2064 = vmatpush1.bf16.msra.mxu1 %v3583_v62  ;;  %v3670_v62 = vld [vmem:[%s5024_s1 + $0x400] ss:$24 sps:$4 sm:$0xff]  }
  0xb0   :  { %2177 = vmatpush1.bf16.msra.mxu0 %v3580_v61  ;;  %2065 = vmatprep.subr.bf16.mxu1 %v3591_v0  ;;  %v3675_v61 = vld [vmem:[%s5024_s1 + $0x7ec] ss:$24 sps:$4 sm:$0xff]  }
  0xb1   :  { %2178 = vmatprep.subr.bf16.mxu0 %v3588_v63  ;;  %v3673_v63 = vld [vmem:[%s5024_s1 + $0x7e8] ss:$24 sps:$4 sm:$0xff]   ;;  %v3678_v0 = vld [vmem:[%s5024_s1 + $0x434] ss:$24 sps:$4 sm:$0xff]  }
  0xb3   :  { %2066 = vmatpush1.bf16.msra.mxu1 %v3589_v2 }
  0xb4   :  { %2179 = vmatpush1.bf16.msra.mxu0 %v3586_v1  ;;  %2067 = vmatprep.subr.bf16.mxu1 %v3597_v4  ;;  %v3681_v1 = vld [vmem:[%s5024_s1 + $0x81c] ss:$24 sps:$4 sm:$0xff]  }
  0xb5   :  { %2180 = vmatprep.subr.bf16.mxu0 %v3594_v3 }
  0xb7   :  { %2068 = vmatpush1.bf16.msra.mxu1 %v3595_v6 }
  0xb8   :  { %2181 = vmatpush1.bf16.msra.mxu0 %v3592_v5  ;;  %2069 = vmatprep.subr.bf16.mxu1 %v3603_v8 }
  0xb9   :  { %2182 = vmatprep.subr.bf16.mxu0 %v3600_v7 }
  0xbb   :  { %2070 = vmatpush1.bf16.msra.mxu1 %v3601_v12 }
  0xbc   :  { %2183 = vmatpush1.bf16.msra.mxu0 %v3598_v9  ;;  %2071 = vmatprep.subr.bf16.mxu1 %v3609_v14 }
  0xbd   :  { %2184 = vmatprep.subr.bf16.mxu0 %v3606_v13 }
  0xbf   :  { %2072 = vmatpush1.bf16.msra.mxu1 %v3607_v16 }
  0xc0   :  { %2185 = vmatpush1.bf16.msra.mxu0 %v3604_v15  ;;  %2082 = vmatprep.subr.bf16.mxu1 %v3615_v19 }
  0xc1   :  { %2186 = vmatprep.subr.bf16.mxu0 %v3612_v18 }
  0xc2   :  { %2074 = vmatmul.mubr.bf16.vlgmr.msra.gmra.mrb[4].mxu1 %v4116_v11 }
  0xc3   :  { %2083 = vmatpush1.bf16.msra.mxu1 %v3613_v21  ;;  %2114 = vmatprep.mubr.bf16.mxu1 %v4190_v35 }
  0xc4   :  { %2187 = vmatpush1.bf16.msra.mxu0 %v3610_v20  ;;  %2084 = vmatprep.subr.bf16.mxu1 %v3621_v23 }
  0xc5   :  { %2188 = vmatprep.subr.bf16.mxu0 %v3618_v22 }
  0xc7   :  { %2085 = vmatpush1.bf16.msra.mxu1 %v3619_v26 }
  0xc8   :  { %2189 = vmatpush1.bf16.msra.mxu0 %v3616_v25  ;;  %2086 = vmatprep.subr.bf16.mxu1 %v3627_v29 }
  0xc9   :  { %2190 = vmatprep.subr.bf16.mxu0 %v3624_v27 }
  0xcb   :  { %2087 = vmatpush1.bf16.msra.mxu1 %v3625_v31 }
  0xcc   :  { %2191 = vmatpush1.bf16.msra.mxu0 %v3622_v30  ;;  %2088 = vmatprep.subr.bf16.mxu1 %v3633_v33 }
  0xcd   :  { %2192 = vmatprep.subr.bf16.mxu0 %v3630_v32 }
  0xcf   :  { %2089 = vmatpush1.bf16.msra.mxu1 %v3631_v36 }
  0xd0   :  { %2193 = vmatpush1.bf16.msra.mxu0 %v3628_v34  ;;  %2090 = vmatprep.subr.bf16.mxu1 %v3639_v38 }
  0xd1   :  { %2194 = vmatprep.subr.bf16.mxu0 %v3636_v37 }
  0xd3   :  { %2091 = vmatpush1.bf16.msra.mxu1 %v3637_v40 }
  0xd4   :  { %2195 = vmatpush1.bf16.msra.mxu0 %v3634_v39  ;;  %2092 = vmatprep.subr.bf16.mxu1 %v3645_v42 }
  0xd5   :  { %2205 = vmatprep.subr.bf16.mxu0 %v3642_v41 }
  0xd7   :  { %2197 = vmatmul.mubr.bf16.vlgmr.msra.gmra.mrb[8].mxu0 %v4114_v10  ;;  %2093 = vmatpush1.bf16.msra.mxu1 %v3643_v44  ;;  %v3657_v10 = vld [vmem:[%s5024_s1 + $0x75c] ss:$24 sps:$4 sm:$0xff]  }
  0xd8   :  { %2206 = vmatpush1.bf16.msra.mxu0 %v3640_v43  ;;  %2094 = vmatprep.subr.bf16.mxu1 %v3651_v46 }
  0xd9   :  { %2207 = vmatprep.subr.bf16.mxu0 %v3648_v45  ;;  %2237 = vmatprep.mubr.bf16.mxu0 %v4044_v51  ;;  %v3661_v51 = vld [vmem:[%s5024_s1 + $0x788] ss:$24 sps:$4 sm:$0xff]  }
  0xdb   :  { %2095 = vmatpush1.bf16.msra.mxu1 %v3649_v48 }
  0xdc   :  { %2208 = vmatpush1.bf16.msra.mxu0 %v3646_v47  ;;  %2096 = vmatprep.subr.bf16.mxu1 %v3657_v10 }
  0xdd   :  { %2209 = vmatprep.subr.bf16.mxu0 %v3654_v49 }
  0xdf   :  { %2097 = vmatpush1.bf16.msra.mxu1 %v3655_v52 }
  0xe0   :  { %2210 = vmatpush1.bf16.msra.mxu0 %v3652_v50  ;;  %2098 = vmatprep.subr.bf16.mxu1 %v3663_v54 }
  0xe1   :  { %2211 = vmatprep.subr.bf16.mxu0 %v3660_v53 }
  0xe3   :  { %2099 = vmatpush1.bf16.msra.mxu1 %v3661_v51 }
  0xe4   :  { %2212 = vmatpush1.bf16.msra.mxu0 %v3658_v55  ;;  %2100 = vmatprep.subr.bf16.mxu1 %v3669_v57 }
  0xe5   :  { %2213 = vmatprep.subr.bf16.mxu0 %v3666_v56 }
  0xe7   :  { %2101 = vmatpush1.bf16.msra.mxu1 %v3667_v59 }
  0xe8   :  { %2214 = vmatpush1.bf16.msra.mxu0 %v3664_v58  ;;  %2102 = vmatprep.subr.bf16.mxu1 %v3675_v61 }
  0xe9   :  { %2215 = vmatprep.subr.bf16.mxu0 %v3672_v60 }
  0xea   :  { %10 = vsyncpa [#allocation3], 0  ;;  %v3676_v2 = vld [vmem:[%s5024_s1 + $0x430] ss:$24 sps:$4 sm:$0xff]   ;;  %v3684_v4 = vld [vmem:[%s5024_s1 + $0x464] ss:$24 sps:$4 sm:$0xff]  }
  0xeb   :  { %2103 = vmatpush1.bf16.msra.mxu1 %v3673_v63  ;;  %v3679_v3 = vld [vmem:[%s5024_s1 + $0x818] ss:$24 sps:$4 sm:$0xff]   ;;  %v3687_v5 = vld [vmem:[%s5024_s1 + $0x84c] ss:$24 sps:$4 sm:$0xff]   ;;  %v3685_v7 = vld [vmem:[%s5024_s1 + $0x848] ss:$24 sps:$4 sm:$0xff]  }
  0xec   :  { %2216 = vmatpush1.bf16.msra.mxu0 %v3670_v62  ;;  %2104 = vmatprep.subr.bf16.mxu1 %v3681_v1  ;;  %v3682_v6 = vld [vmem:[%s5024_s1 + $0x460] ss:$24 sps:$4 sm:$0xff]   ;;  %v3690_v8 = vld [vmem:[%s5024_s1 + $0x494] ss:$24 sps:$4 sm:$0xff]   ;;  %v3688_v12 = vld [vmem:[%s5024_s1 + $0x490] ss:$24 sps:$4 sm:$0xff]  }
  0xed   :  { %2217 = vmatprep.subr.bf16.mxu0 %v3678_v0  ;;  %v3693_v9 = vld [vmem:[%s5024_s1 + $0x87c] ss:$24 sps:$4 sm:$0xff]   ;;  %v3691_v13 = vld [vmem:[%s5024_s1 + $0x878] ss:$24 sps:$4 sm:$0xff]   ;;  %v3699_v15 = vld [vmem:[%s5024_s1 + $0x8ac] ss:$24 sps:$4 sm:$0xff]  }
  0xee   :  { %v3696_v14 = vld [vmem:[%s5024_s1 + $0x4c4] ss:$24 sps:$4 sm:$0xff]   ;;  %v3694_v16 = vld [vmem:[%s5024_s1 + $0x4c0] ss:$24 sps:$4 sm:$0xff]   ;;  %v3702_v19 = vld [vmem:[%s5024_s1 + $0x4f4] ss:$24 sps:$4 sm:$0xff]  }
  0xef   :  { %2105 = vmatpush1.bf16.msra.mxu1 %v3679_v3  ;;  %v3697_v18 = vld [vmem:[%s5024_s1 + $0x8a8] ss:$24 sps:$4 sm:$0xff]   ;;  %v3705_v20 = vld [vmem:[%s5024_s1 + $0x8dc] ss:$24 sps:$4 sm:$0xff]   ;;  %v3703_v22 = vld [vmem:[%s5024_s1 + $0x8d8] ss:$24 sps:$4 sm:$0xff]  }
  0xf0   :  { %2218 = vmatpush1.bf16.msra.mxu0 %v3676_v2  ;;  %2106 = vmatprep.subr.bf16.mxu1 %v3687_v5  ;;  %v3700_v21 = vld [vmem:[%s5024_s1 + $0x4f0] ss:$24 sps:$4 sm:$0xff]   ;;  %v3708_v23 = vld [vmem:[%s5024_s1 + $0x524] ss:$24 sps:$4 sm:$0xff]   ;;  %v3706_v26 = vld [vmem:[%s5024_s1 + $0x520] ss:$24 sps:$4 sm:$0xff]  }
  0xf1   :  { %2219 = vmatprep.subr.bf16.mxu0 %v3684_v4  ;;  %v3769_v25 = vld [vmem:[%s5026_s3 + $0x40] sm:$0xff]   ;;  %v3711_v29 = vld [vmem:[%s5024_s1 + $0x554] ss:$24 sps:$4 sm:$0xff]   ;;  %v3709_v31 = vld [vmem:[%s5024_s1 + $0x550] ss:$24 sps:$4 sm:$0xff]   ;;  %vm2851_vm1 = vcmask 80896  }
  0xf2   :  { %v3773_v27 = vld [vmem:[%s5026_s3] sm:$0xff]   ;;  %v3774_v30 = vld [vmem:[%s5026_s3 + $0x48] sm:$0xff]   ;;  %v3776_v34 = vld [vmem:[%s5026_s3 + $0x50] sm:$0xff]  }
  0xf3   :  { %2107 = vmatpush1.bf16.msra.mxu1 %v3685_v7  ;;  %v3775_v32 = vld [vmem:[%s5026_s3 + $0x8] sm:$0xff]   ;;  %v3714_v33 = vld [vmem:[%s5024_s1 + $0x584] ss:$24 sps:$4 sm:$0xff]   ;;  %v3712_v36 = vld [vmem:[%s5024_s1 + $0x580] ss:$24 sps:$4 sm:$0xff]  }
  0xf4   :  { %2220 = vmatpush1.bf16.msra.mxu0 %v3682_v6  ;;  %2108 = vmatprep.subr.bf16.mxu1 %v3693_v9  ;;  %v3777_v37 = vld [vmem:[%s5026_s3 + $0x10] sm:$0xff]   ;;  %v3778_v39 = vld [vmem:[%s5026_s3 + $0x58] sm:$0xff]   ;;  %v3780_v43 = vld [vmem:[%s5026_s3 + $0x60] sm:$0xff]  }
  0xf5   :  { %2221 = vmatprep.subr.bf16.mxu0 %v3690_v8  ;;  %v3717_v38 = vld [vmem:[%s5024_s1 + $0x5b4] ss:$24 sps:$4 sm:$0xff]   ;;  %v3715_v40 = vld [vmem:[%s5024_s1 + $0x5b0] ss:$24 sps:$4 sm:$0xff]   ;;  %v3779_v41 = vld [vmem:[%s5026_s3 + $0x18] sm:$0xff]  }
  0xf6   :  { %v3720_v42 = vld [vmem:[%s5024_s1 + $0x5e4] ss:$24 sps:$4 sm:$0xff]   ;;  %v3718_v44 = vld [vmem:[%s5024_s1 + $0x5e0] ss:$24 sps:$4 sm:$0xff]   ;;  %v3723_v46 = vld [vmem:[%s5024_s1 + $0x614] ss:$24 sps:$4 sm:$0xff]  }
  0xf7   :  { %2109 = vmatpush1.bf16.msra.mxu1 %v3691_v13  ;;  %v3781_v45 = vld [vmem:[%s5026_s3 + $0x20] sm:$0xff]   ;;  %v3782_v47 = vld [vmem:[%s5026_s3 + $0x68] sm:$0xff]   ;;  %v3784_v52 = vld [vmem:[%s5026_s3 + $0x70] sm:$0xff]  }
  0xf8   :  { %2222 = vmatpush1.bf16.msra.mxu0 %v3688_v12  ;;  %2110 = vmatprep.subr.bf16.mxu1 %v3699_v15  ;;  %v3721_v48 = vld [vmem:[%s5024_s1 + $0x610] ss:$24 sps:$4 sm:$0xff]   ;;  %v3726_v49 = vld [vmem:[%s5024_s1 + $0x644] ss:$24 sps:$4 sm:$0xff]   ;;  %v3724_v54 = vld [vmem:[%s5024_s1 + $0x640] ss:$24 sps:$4 sm:$0xff]  }
  0xf9   :  { %2223 = vmatprep.subr.bf16.mxu0 %v3696_v14  ;;  %v3783_v10 = vld [vmem:[%s5026_s3 + $0x28] sm:$0xff]   ;;  %v3786_v57 = vld [vmem:[%s5026_s3 + $0x78] sm:$0xff]   ;;  %v3788_v60 = vld [vmem:[%s5026_s3 + $0xc0] sm:$0xff]  }
  0xfa   :  { %v3729_v51 = vld [vmem:[%s5024_s1 + $0x674] ss:$24 sps:$4 sm:$0xff]   ;;  %v3732_v58 = vld [vmem:[%s5024_s1 + $0x6a4] ss:$24 sps:$4 sm:$0xff]   ;;  %v3730_v61 = vld [vmem:[%s5024_s1 + $0x6a0] ss:$24 sps:$4 sm:$0xff]  }
  0xfb   :  { %2111 = vmatpush1.bf16.msra.mxu1 %v3697_v18  ;;  %v3787_v59 = vld [vmem:[%s5026_s3 + $0x38] sm:$0xff]   ;;  %v3735_v62 = vld [vmem:[%s5024_s1 + $0x6d4] ss:$24 sps:$4 sm:$0xff]   ;;  %v3733_v63 = vld [vmem:[%s5024_s1 + $0x6d0] ss:$24 sps:$4 sm:$0xff]  }
  0xfc   :  { %2224 = vmatpush1.bf16.msra.mxu0 %v3694_v16  ;;  %2112 = vmatprep.subr.bf16.mxu1 %v3705_v20  ;;  %v3738_v0 = vld [vmem:[%s5024_s1 + $0x704] ss:$24 sps:$4 sm:$0xff]   ;;  %v3736_v1 = vld [vmem:[%s5024_s1 + $0x700] ss:$24 sps:$4 sm:$0xff]   ;;  %v3741_v2 = vld [vmem:[%s5024_s1 + $0x734] ss:$24 sps:$4 sm:$0xff]  }
  0xfd   :  { %2225 = vmatprep.subr.bf16.mxu0 %v3702_v19  ;;  %v3739_v3 = vld [vmem:[%s5024_s1 + $0x730] ss:$24 sps:$4 sm:$0xff]   ;;  %v3744_v4 = vld [vmem:[%s5024_s1 + $0x764] ss:$24 sps:$4 sm:$0xff]   ;;  %v3742_v5 = vld [vmem:[%s5024_s1 + $0x760] ss:$24 sps:$4 sm:$0xff]  }
  0xfe   :  { %v3747_v6 = vld [vmem:[%s5024_s1 + $0x794] ss:$24 sps:$4 sm:$0xff]   ;;  %v3745_v7 = vld [vmem:[%s5024_s1 + $0x790] ss:$24 sps:$4 sm:$0xff]   ;;  %v3750_v8 = vld [vmem:[%s5024_s1 + $0x7c4] ss:$24 sps:$4 sm:$0xff]  }
  0xff   :  { %2113 = vmatpush1.bf16.msra.mxu1 %v3703_v22  ;;  %v3748_v9 = vld [vmem:[%s5024_s1 + $0x7c0] ss:$24 sps:$4 sm:$0xff]   ;;  %v3753_v12 = vld [vmem:[%s5024_s1 + $0x7f4] ss:$24 sps:$4 sm:$0xff]   ;;  %v3751_v13 = vld [vmem:[%s5024_s1 + $0x7f0] ss:$24 sps:$4 sm:$0xff]  }
 0x100   :  { %2226 = vmatpush1.bf16.msra.mxu0 %v3700_v21  ;;  %3225 = vmatprep.subr.bf16.mxu1 %v3769_v25  ;;  %v3756_v14 = vld [vmem:[%s5024_s1 + $0x824] ss:$24 sps:$4 sm:$0xff]   ;;  %v3754_v15 = vld [vmem:[%s5024_s1 + $0x820] ss:$24 sps:$4 sm:$0xff]   ;;  %v3759_v16 = vld [vmem:[%s5024_s1 + $0x854] ss:$24 sps:$4 sm:$0xff]  }
 0x101   :  { %2227 = vmatprep.subr.bf16.mxu0 %v3708_v23  ;;  %v3757_v18 = vld [vmem:[%s5024_s1 + $0x850] ss:$24 sps:$4 sm:$0xff]   ;;  %v3762_v19 = vld [vmem:[%s5024_s1 + $0x884] ss:$24 sps:$4 sm:$0xff]   ;;  %v3760_v20 = vld [vmem:[%s5024_s1 + $0x880] ss:$24 sps:$4 sm:$0xff]  }
 0x102   :  { %2115 = vmatmul.mubr.bf16.vlgmr.msra.gmra.mrb[4].mxu1 %v4316_v17  ;;  %v3765_v21 = vld [vmem:[%s5024_s1 + $0x8b4] ss:$24 sps:$4 sm:$0xff]   ;;  %v3763_v22 = vld [vmem:[%s5024_s1 + $0x8b0] ss:$24 sps:$4 sm:$0xff]   ;;  %v3768_v23 = vld [vmem:[%s5024_s1 + $0x8e4] ss:$24 sps:$4 sm:$0xff]  }
 0x103   :  { %3226 = vmatpush3.bf16.msra.mxu1 %v3773_v27  ;;  %v3766_v25 = vld [vmem:[%s5024_s1 + $0x8e0] ss:$24 sps:$4 sm:$0xff]   ;;  %v3772_v27 = vld [vmem:[%s5024_s1 + $0x914] ss:$24 sps:$4 sm:$0xff]  }
 0x104   :  { %2228 = vmatpush1.bf16.msra.mxu0 %v3706_v26  ;;  %3227 = vmatprep.subr.bf16.mxu1 %v3774_v30  ;;  %v332_v26 = vlaneseq }
 0x105   :  { %2229 = vmatprep.subr.bf16.mxu0 %v3711_v29  ;;  %v3770_v29 = vld [vmem:[%s5024_s1 + $0x910] ss:$24 sps:$4 sm:$0xff]  }
 0x106   :  { %v4887_v30 = vshrl.u32 %v332_v26, 7  ;;  %v3812_v26 = vld [vmem:[%s5026_s3 + $0x160] sm:$0xff]  }
 0x107   :  { %3228 = vmatpush3.bf16.msra.mxu1 %v3775_v32  ;;  %v4895_v32 = vld [vmem:[%s5025_s2] sm:$0x3f] }
 0x108   :  { %2230 = vmatpush1.bf16.msra.mxu0 %v3709_v31  ;;  %3229 = vmatprep.subr.bf16.mxu1 %v3776_v34  ;;  %v334_v31 = vsub.s32 0, %v4887_v30 }
 0x109   :  { %2231 = vmatprep.subr.bf16.mxu0 %v3714_v33  ;;  %v338_v33 = vsub.s32 1, %v4887_v30 }
 0x10a   :  { %v335_v34 = vrot.slane %v4895_v32, %v334_v31  ;;  %v3815_v31 = vld [vmem:[%s5026_s3 + $0x128] sm:$0xff]  }
 0x10b   :  { %3230 = vmatpush3.bf16.msra.mxu1 %v3777_v37 }
 0x10c   :  { %2232 = vmatpush1.bf16.msra.mxu0 %v3712_v36  ;;  %3231 = vmatprep.subr.bf16.mxu1 %v3778_v39  ;;  %v339_v36 = vrot.slane %v4895_v32, %v338_v33  ;;  %v3816_v33 = vld [vmem:[%s5026_s3 + $0x170] sm:$0xff]  }
 0x10d   :  { %2233 = vmatprep.subr.bf16.mxu0 %v3717_v38 }
 0x10f   :  { %3232 = vmatpush3.bf16.msra.mxu1 %v3779_v41 }
 0x110   :  { %2234 = vmatpush1.bf16.msra.mxu0 %v3715_v40  ;;  %3233 = vmatprep.subr.bf16.mxu1 %v3780_v43 }
 0x111   :  { %2235 = vmatprep.subr.bf16.mxu0 %v3720_v42 }
 0x113   :  { %3234 = vmatpush3.bf16.msra.mxu1 %v3781_v45 }
 0x114   :  { %2236 = vmatpush1.bf16.msra.mxu0 %v3718_v44  ;;  %3235 = vmatprep.subr.bf16.mxu1 %v3782_v47 }
 0x115   :  { %2246 = vmatprep.subr.bf16.mxu0 %v3723_v46  ;;  %v4773_v50 = vpop.f32.mrb[0].mxu1 }
 0x116   :  { %v4779_v53 = vpop.f32.mrb[1].mxu1  ;;  %v1871_v37 = vadd.f32 %v4773_v50, %v335_v34  ;;  %v3817_v34 = vld [vmem:[%s5026_s3 + $0x130] sm:$0xff]  }
 0x117   :  { %2238 = vmatmul.mubr.bf16.vlgmr.msra.gmra.mrb[8].mxu0 %v4116_v11  ;;  %v1874_v55 = vpop.f32.mrb[2].mxu1  ;;  %3236 = vmatpush3.bf16.msra.mxu1 %v3783_v10  ;;  %v3785_v11 = vld [vmem:[%s5026_s3 + $0x30] sm:$0xff]  }
 0x118   :  { %2247 = vmatpush1.bf16.msra.mxu0 %v3721_v48  ;;  %2278 = vmatprep.mubr.bf16.mxu0 %v4190_v35  ;;  %v1875_v56 = vpop.f32.mrb[3].mxu1  ;;  %v3727_v35 = vld [vmem:[%s5024_s1 + $0x670] ss:$24 sps:$4 sm:$0xff]   ;;  %v3794_v55 = vld [vmem:[%s5026_s3 + $0xd8] sm:$0xff]  }
 0x119   :  { %2248 = vmatprep.subr.bf16.mxu0 %v3726_v49  ;;  %3237 = vmatprep.subr.bf16.mxu1 %v3784_v52  ;;  %v3789_v49 = vld [vmem:[%s5026_s3 + $0x80] sm:$0xff]   ;;  %v3791_v52 = vld [vmem:[%s5026_s3 + $0x88] sm:$0xff]  }
 0x11a   :  { %v3796_v56 = vld [vmem:[%s5026_s3 + $0xe0] sm:$0xff]  }
 0x11b   :  { %3238 = vmatpush3.bf16.msra.mxu1 %v3785_v11  ;;  %v3797_v11 = vld [vmem:[%s5026_s3 + $0xa0] sm:$0xff]  }
 0x11c   :  { %2249 = vmatpush1.bf16.msra.mxu0 %v3724_v54  ;;  %3239 = vmatprep.subr.bf16.mxu1 %v3786_v57  ;;  %v3793_v54 = vld [vmem:[%s5026_s3 + $0x90] sm:$0xff]   ;;  %v3798_v57 = vld [vmem:[%s5026_s3 + $0xe8] sm:$0xff]  }
 0x11d   :  { %2250 = vmatprep.subr.bf16.mxu0 %v3729_v51  ;;  %v3795_v51 = vld [vmem:[%s5026_s3 + $0x98] sm:$0xff]  }
 0x11f   :  { %3240 = vmatpush3.bf16.msra.mxu1 %v3787_v59  ;;  %v3801_v59 = vld [vmem:[%s5026_s3 + $0xb0] sm:$0xff]  }
 0x120   :  { %2251 = vmatpush1.bf16.msra.mxu0 %v3727_v35  ;;  %3247 = vmatprep.subr.bf16.mxu1 %v3788_v60  ;;  %v3799_v35 = vld [vmem:[%s5026_s3 + $0xa8] sm:$0xff]   ;;  %v3802_v60 = vld [vmem:[%s5026_s3 + $0xf8] sm:$0xff]  }
 0x121   :  { %2252 = vmatprep.subr.bf16.mxu0 %v3732_v58  ;;  %v3800_v58 = vld [vmem:[%s5026_s3 + $0xf0] sm:$0xff]  }
 0x124   :  { %2253 = vmatpush1.bf16.msra.mxu0 %v3730_v61  ;;  %v3803_v61 = vld [vmem:[%s5026_s3 + $0xb8] sm:$0xff]  }
 0x125   :  { %2254 = vmatprep.subr.bf16.mxu0 %v3735_v62  ;;  %v3804_v62 = vld [vmem:[%s5026_s3 + $0x140] sm:$0xff]  }
 0x128   :  { %2255 = vmatpush1.bf16.msra.mxu0 %v3733_v63  ;;  %v342_v63 = vsub.s32 2, %v4887_v30 }
 0x129   :  { %2256 = vmatprep.subr.bf16.mxu0 %v3738_v0  ;;  %v346_v0 = vsub.s32 3, %v4887_v30 }
 0x12c   :  { %2257 = vmatpush1.bf16.msra.mxu0 %v3736_v1  ;;  %v343_v1 = vrot.slane %v4895_v32, %v342_v63 }
 0x12d   :  { %2258 = vmatprep.subr.bf16.mxu0 %v3741_v2  ;;  %v347_v2 = vrot.slane %v4895_v32, %v346_v0 }
 0x130   :  { %2259 = vmatpush1.bf16.msra.mxu0 %v3739_v3 }
 0x131   :  { %2260 = vmatprep.subr.bf16.mxu0 %v3744_v4 }
 0x134   :  { %2261 = vmatpush1.bf16.msra.mxu0 %v3742_v5 }
 0x135   :  { %2262 = vmatprep.subr.bf16.mxu0 %v3747_v6 }
 0x138   :  { %2263 = vmatpush1.bf16.msra.mxu0 %v3745_v7 }
 0x139   :  { %2264 = vmatprep.subr.bf16.mxu0 %v3750_v8 }
 0x13c   :  { %2265 = vmatpush1.bf16.msra.mxu0 %v3748_v9 }
 0x13d   :  { %2266 = vmatprep.subr.bf16.mxu0 %v3753_v12 }
 0x140   :  { %2267 = vmatpush1.bf16.msra.mxu0 %v3751_v13 }
 0x141   :  { %2268 = vmatprep.subr.bf16.mxu0 %v3756_v14 }
 0x144   :  { %2269 = vmatpush1.bf16.msra.mxu0 %v3754_v15  ;;  %v3805_v15 = vld [vmem:[%s5026_s3 + $0x100] sm:$0xff]  }
 0x145   :  { %2270 = vmatprep.subr.bf16.mxu0 %v3759_v16 }
 0x148   :  { %2271 = vmatpush1.bf16.msra.mxu0 %v3757_v18  ;;  %v3806_v18 = vld [vmem:[%s5026_s3 + $0x148] sm:$0xff]  }
 0x149   :  { %2272 = vmatprep.subr.bf16.mxu0 %v3762_v19 }
 0x14c   :  { %2273 = vmatpush1.bf16.msra.mxu0 %v3760_v20  ;;  %v3807_v20 = vld [vmem:[%s5026_s3 + $0x108] sm:$0xff]  }
 0x14d   :  { %2274 = vmatprep.subr.bf16.mxu0 %v3765_v21  ;;  %v3808_v21 = vld [vmem:[%s5026_s3 + $0x150] sm:$0xff]  }
 0x150   :  { %2275 = vmatpush1.bf16.msra.mxu0 %v3763_v22  ;;  %v3809_v22 = vld [vmem:[%s5026_s3 + $0x110] sm:$0xff]  }
 0x151   :  { %2276 = vmatprep.subr.bf16.mxu0 %v3768_v23  ;;  %v3810_v23 = vld [vmem:[%s5026_s3 + $0x158] sm:$0xff]  }
 0x154   :  { %2277 = vmatpush1.bf16.msra.mxu0 %v3766_v25  ;;  %v3811_v25 = vld [vmem:[%s5026_s3 + $0x118] sm:$0xff]  }
 0x155   :  { %2287 = vmatprep.subr.bf16.mxu0 %v3772_v27  ;;  %v3813_v27 = vld [vmem:[%s5026_s3 + $0x120] sm:$0xff]  }
 0x157   :  { %2279 = vmatmul.mubr.bf16.vlgmr.msra.gmra.mrb[8].mxu0 %v4316_v17  ;;  %v1873_v17 = vadd.f32 %v4779_v53, %v339_v36  ;;  %v3792_v53 = vld [vmem:[%s5026_s3 + $0xd0] sm:$0xff]   ;;  %v3818_v36 = vld [vmem:[%s5026_s3 + $0x178] sm:$0xff]  }
 0x158   :  { %2288 = vmatpush1.bf16.msra.mxu0 %v3770_v29  ;;  %2319 = vmatprep.mubr.bf16.mxu0 %v3860_v24  ;;  %v3814_v29 = vld [vmem:[%s5026_s3 + $0x168] sm:$0xff]  }
 0x162   :  { %v1993_v38 = vpop.f32.mrb[0].mxu0 }
 0x163   :  { %v3292_v39 = vadd.f32 %v1993_v38, %v1871_v37  ;;  %3175 = vmatmul.mubr.msk.bf16.vlgmr.msra.gmra.mrb[8].mxu0 %vm1832_vm0, %v4349_v28  ;;  %v1995_v24 = vpop.f32.mrb[1].mxu0  ;;  %v3790_v28 = vld [vmem:[%s5026_s3 + $0xc8] sm:$0xff]   ;;  %v3819_v37 = vld [vmem:[%s5026_s3 + $0x138] sm:$0xff]   ;;  %v354_v38 = vsub.s32 5, %v4887_v30 }
 0x164   :  { %v3294_v40 = vadd.f32 %v1995_v24, %v1873_v17  ;;  %v1997_v41 = vpop.f32.mrb[2].mxu0  ;;  %v350_v17 = vsub.s32 4, %v4887_v30 }
 0x165   :  { %v2328_v42 = vpack.c.bf16 %v3292_v39, %v3292_v39  ;;  %v1998_v43 = vpop.f32.mrb[3].mxu0  ;;  %v355_v24 = vrot.slane %v4895_v32, %v354_v38 }
 0x166   :  { %v2329_v44 = vpack.c.bf16 %v3294_v40, %v3294_v40  ;;  %v351_v39 = vrot.slane %v4895_v32, %v350_v17  ;;  %v3176_v32 = vld [vmem:[%s5027_s4] ss:$0 sm:$0xff]  ;;  %s3861_s4 = smov [#allocation2]  }
 0x167   :  { %s2871_s22 = sshll.u32 %s3861_s4, 4  ;;  %s2872_s22 = int_to_ptr.vmem [resolvable:$true] %s2871_s22 }
 0x168   :  { %3820 = vtanh.bf16 %v2329_v44  ;;  %s3836_s23 = scalar_lea.vmem %s2872_s22, 128  ;;  %p3841_p1 = scmp.lt.s32.totalorder %s2872_s22, %s2872_s22 }
 0x169   :  { %3822 = vtanh.bf16 %v2328_v42  ;;  %p3837_p0 = scmp.ne.s32.totalorder %s2872_s22, %s3836_s23  ;;  %p3842_p2 = scmp.lt.s32.totalorder %s3836_s23, %s3836_s23 }
 0x16a   :  { %v2157_v45 = vpop.f32.mrb[4].mxu0 }
 0x16b   :  { %v2159_v46 = vpop.f32.mrb[5].mxu0  ;;  %p3843_p3 = por %p3842_p2, %p3841_p1 }
 0x16c   :  { %v2161_v47 = vpop.f32.mrb[6].mxu0 }
 0x16d   :  { %v2162_v48 = vpop.f32.mrb[7].mxu0  ;;  %p3844_p4 = pnand %p3843_p3, %p3837_p0 }
 0x173   :  { %v3821_v10 = vpop.eup %3820 }
 0x174   :  { %v3823_v50 = vpop.eup %3822  ;;  %2763 = vmatprep.mubr.bf16.mxu1 %v3821_v10 }
 0x175   :  { %2764 = vmatmul.mubr.bf16.vlgmr.msra.gmra.mrb[8].mxu1 %v3823_v50 }
 0x176   :  { %3248 = vmatpush3.bf16.msra.mxu1 %v3789_v49 }
 0x177   :  { %3249 = vmatprep.subr.bf16.mxu1 %v3790_v28 }
 0x17a   :  { %3250 = vmatpush3.bf16.msra.mxu1 %v3791_v52 }
 0x17b   :  { %3251 = vmatprep.subr.bf16.mxu1 %v3792_v53 }
 0x17e   :  { %3252 = vmatpush3.bf16.msra.mxu1 %v3793_v54 }
 0x17f   :  { %3253 = vmatprep.subr.bf16.mxu1 %v3794_v55 }
 0x182   :  { %3254 = vmatpush3.bf16.msra.mxu1 %v3795_v51 }
 0x183   :  { %3255 = vmatprep.subr.bf16.mxu1 %v3796_v56 }
 0x186   :  { %3256 = vmatpush3.bf16.msra.mxu1 %v3797_v11 }
 0x187   :  { %3257 = vmatprep.subr.bf16.mxu1 %v3798_v57 }
 0x18a   :  { %3258 = vmatpush3.bf16.msra.mxu1 %v3799_v35 }
 0x18b   :  { %3259 = vmatprep.subr.bf16.mxu1 %v3800_v58 }
 0x18e   :  { %3260 = vmatpush3.bf16.msra.mxu1 %v3801_v59 }
 0x18f   :  { %3261 = vmatprep.subr.bf16.mxu1 %v3802_v60 }
 0x192   :  { %3262 = vmatpush3.bf16.msra.mxu1 %v3803_v61 }
 0x193   :  { %3269 = vmatprep.subr.bf16.mxu1 %v3804_v62 }
 0x1d5   :  { %v2116_v3 = vpop.f32.mrb[4].mxu1 }
 0x1d6   :  { %v3295_v4 = vadd.f32 %v2116_v3, %v343_v1  ;;  %v2118_v5 = vpop.f32.mrb[5].mxu1 }
 0x1d7   :  { %v3297_v6 = vadd.f32 %v2118_v5, %v347_v2  ;;  %v2120_v7 = vpop.f32.mrb[6].mxu1 }
 0x1d8   :  { %v3296_v8 = vadd.f32 %v3295_v4, %v2157_v45  ;;  %v2121_v9 = vpop.f32.mrb[7].mxu1 }
 0x1d9   :  { %v3298_v12 = vadd.f32 %v3297_v6, %v2159_v46 }
 0x1da   :  { %v2330_v13 = vpack.c.bf16 %v3296_v8, %v3296_v8 }
 0x1db   :  { %v2331_v14 = vpack.c.bf16 %v3298_v12, %v3298_v12 }
 0x1dd   :  { %3824 = vtanh.bf16 %v2331_v14 }
 0x1de   :  { %3826 = vtanh.bf16 %v2330_v13 }
 0x1e8   :  { %v3825_v16 = vpop.eup %3824 }
 0x1e9   :  { %v3827_v19 = vpop.eup %3826  ;;  %2803 = vmatprep.mubr.bf16.mxu1 %v3825_v16 }
 0x1ea   :  { %2804 = vmatmul.mubr.bf16.vlgmr.msra.gmra.mrb[12].mxu1 %v3827_v19 }
 0x1eb   :  { %3270 = vmatpush3.bf16.msra.mxu1 %v3805_v15 }
 0x1ec   :  { %3271 = vmatprep.subr.bf16.mxu1 %v3806_v18 }
 0x1ef   :  { %3272 = vmatpush3.bf16.msra.mxu1 %v3807_v20 }
 0x1f0   :  { %3273 = vmatprep.subr.bf16.mxu1 %v3808_v21 }
 0x1f3   :  { %3274 = vmatpush3.bf16.msra.mxu1 %v3809_v22 }
 0x1f4   :  { %3275 = vmatprep.subr.bf16.mxu1 %v3810_v23 }
 0x1f7   :  { %3276 = vmatpush3.bf16.msra.mxu1 %v3811_v25 }
 0x1f8   :  { %3277 = vmatprep.subr.bf16.mxu1 %v3812_v26 }
 0x1fb   :  { %3278 = vmatpush3.bf16.msra.mxu1 %v3813_v27 }
 0x1fc   :  { %3279 = vmatprep.subr.bf16.mxu1 %v3814_v29 }
 0x1ff   :  { %3280 = vmatpush3.bf16.msra.mxu1 %v3815_v31 }
 0x200   :  { %3281 = vmatprep.subr.bf16.mxu1 %v3816_v33 }
 0x203   :  { %3282 = vmatpush3.bf16.msra.mxu1 %v3817_v34 }
 0x204   :  { %3283 = vmatprep.subr.bf16.mxu1 %v3818_v36 }
 0x207   :  { %3284 = vmatpush3.bf16.msra.mxu1 %v3819_v37 }
 0x236   :  { %v2321_v40 = vpop.f32.mrb[8].mxu0 }
 0x237   :  { %v3299_v41 = vadd.f32 %v2321_v40, %v351_v39  ;;  %v2323_v42 = vpop.f32.mrb[9].mxu0 }
 0x238   :  { %v3300_v43 = vadd.f32 %v2323_v42, %v355_v24  ;;  %v2325_v44 = vpop.f32.mrb[10].mxu0 }
 0x239   :  { %v2332_v45 = vpack.c.bf16 %v3299_v41, %v3299_v41  ;;  %v2326_v46 = vpop.f32.mrb[11].mxu0 }
 0x23a   :  { %v2333_v47 = vpack.c.bf16 %v3300_v43, %v3300_v43 }
 0x23c   :  { %3828 = vtanh.bf16 %v2333_v47 }
 0x23d   :  { %3830 = vtanh.bf16 %v2332_v45 }
 0x247   :  { %v3829_v48 = vpop.eup %3828 }
 0x248   :  { %v3831_v49 = vpop.eup %3830  ;;  %2843 = vmatprep.mubr.bf16.mxu1 %v3829_v48  ;;  %v3241_v10 = vpop.f32.mrb[8].mxu1 }
 0x249   :  { %2844 = vmatmul.mubr.bf16.vlgmr.msra.gmra.mrb[16].mxu1 %v3831_v49  ;;  %v3242_v30 = vpop.f32.mrb[9].mxu1 }
 0x24a   :  { %v3243_v28 = vadd.f32 %v3242_v30, %v3241_v10  ;;  %v3244_v50 = vpop.f32.mrb[10].mxu1 }
 0x24b   :  { %v3245_v52 = vpop.f32.mrb[11].mxu1 }
 0x24c   :  { %v2766_v55 = vadd.f32 %v3243_v28, %v3176_v32 }
 0x2bd   :  { %v3263_v53 = vpop.f32.mrb[12].mxu1 }
 0x2be   :  { %v3264_v54 = vpop.f32.mrb[13].mxu1 }
 0x2bf   :  { %v3265_v51 = vadd.f32 %v3264_v54, %v3263_v53  ;;  %v3266_v56 = vpop.f32.mrb[14].mxu1 }
 0x2c0   :  { %v3267_v11 = vpop.f32.mrb[15].mxu1 }
 0x2c1   :  { %v2806_v57 = vadd.f32 %v3265_v51, %v2766_v55 }
 0x31c   :  { %v3285_v35 = vpop.f32.mrb[16].mxu1 }
 0x31d   :  { %v3286_v58 = vpop.f32.mrb[17].mxu1 }
 0x31e   :  { %v3287_v59 = vadd.f32 %v3286_v58, %v3285_v35  ;;  %v3288_v60 = vpop.f32.mrb[18].mxu1 }
 0x31f   :  { %v3289_v61 = vpop.f32.mrb[19].mxu1 }
 0x320   :  { %v2846_v62 = vadd.f32 %v3287_v59, %v2806_v57 }
 0x322   :  { %v2852_v63 = vsel %vm2851_vm1, %v2846_v62, -inf }
 0x323   :  { %2853 = vmax.xlane.f32.xlu0 %v2852_v63 }
 0x3b0   :  { %v2854_v0 = vpop.xlane.xlu0 %2853 }
 0x3b1   :  { %v2855_v1 = vsub.f32 %v2846_v62, %v2854_v0 }
 0x3b3   :  { %v2856_v2 = vmul.f32 1.442695, %v2855_v1 }
 0x3b5   :  { %3832 = vpow2.f32 %v2856_v2 }
 0x3bf   :  { %v3833_v3 = vpop.eup %3832 }
 0x3c0   :  { %v2858_v4 = vsel %vm2851_vm1, %v3833_v3, 0.0 }
 0x3c1   :  { %2859 = vadd.xlane.f32.xlu0 %v2858_v4 }
 0x44e   :  { %v2860_v5 = vpop.xlane.xlu0 %2859 }
 0x44f   :  { %3834 = vlog2.f32 %v2860_v5 }
 0x459   :  { %v3835_v6 = vpop.eup %3834 }
 0x45a   :  { %v2862_v7 = vmul.f32 0.6931472, %v3835_v6 }
 0x45c   :  { %v2863_v8 = vsub.f32 %v2855_v1, %v2862_v7 }
 0x45e   :  { %2864 = vst.msk [vmem:[#allocation2] sm:$0xff] %vm2851_vm1, %v2863_v8 }
 0x45f   :  { %3847 = shalt.err (!%p3844_p4)
}
 0x460   :  { %s3848_s26 = scalar_lea.hbm %s5028_s5, 128 }
 0x461   :  { %p3849_p5 = scmp.ne.s32.totalorder %s5028_s5, %s3848_s26  ;;  %p3852_p6 = scmp.lt.u32.totalorder %s3848_s26, %s5028_s5 }
 0x463   :  { %p3854_p7 = pnand %p3852_p6, %p3849_p5 }
 0x465   :  { %3857 = shalt.err (!%p3854_p7)
}
 0x466   :  { %2874 = dma.vmem_to_hbm [thread:$0]  %s2872_s22, 128, %s5028_s5, [#allocation3]  }
 0x467   :  { %3858 = dma.done.wait [#allocation3], 128  }
 0x468   :  { %3859 = vsyncadd [#allocation3], 4294967168 }
 0x469   :  { %2878 = vsyncpa [#allocation3], 1 }

</bundles_post_ra>
